<compile_context>
chip_gen: v5e
topology: v5e:2x2
jax: 0.10.0
libtpu: 0.0.40
codegen_flags: <defaults>
</compile_context>

<pallas_src>
import functools

import jax
import jax.numpy as jnp
from jax.experimental import pallas as pl
from jax.experimental.pallas import tpu as pltpu

L = 16                      # stands in for X.shape[1] (excel feature-column count)
HID1, HID2, OUT = 120, 84, 27
HID1_PAD, HID2_PAD, OUT_PAD = 128, 128, 128


def _round_up(n, m):
    return (n + m - 1) // m * m


def _epilogue_dtype():
    """bf16 bias+ReLU epilogue on v6e/v7x; f32 on v5-class chips (no bf16 VPU)."""
    try:
        kind = jax.devices()[0].device_kind.lower()
    except Exception:
        return jnp.bfloat16
    return jnp.float32 if "v5" in kind else jnp.bfloat16


def _cnn_fused_kernel(x_ref,
                      s1_ref, b1_ref,      # conv1 (scatter) weight / bias
                      bd2_ref, b2_ref,     # conv2 block-diag weight / bias
                      bd3_ref, b3_ref,     # conv3 block-diag weight / bias
                      wl1_ref, bl1_ref,    # linear1 (permuted, padded)
                      wl2_ref, bl2_ref,    # linear2 (padded)
                      wl3_ref, bl3_ref,    # linear3 (padded to 128 cols)
                      o_ref, *, epi_dtype):
    f32, bf16 = jnp.float32, jnp.bfloat16

    def mm_relu(h, w_ref, b_ref):
        acc = jnp.dot(h.astype(bf16), w_ref[...], preferred_element_type=f32)
        return jnp.maximum(acc.astype(epi_dtype) + b_ref[...], 0.0)

    h = x_ref[...]                        # (TB, L), already bf16 from wrapper
    h = mm_relu(h, s1_ref, b1_ref)        # conv1+relu   (maxpool k=1,s=1 = id)
    h = mm_relu(h, bd2_ref, b2_ref)       # conv2+relu   (maxpool k=1,s=1 = id)
    h = mm_relu(h, bd3_ref, b3_ref)       # conv3+relu            (TB, 40L)
    # flatten is a no-op: h is (TB, L*40) in (l, c) order and linear1's weight
    # was permuted at trace time to match.
    h = mm_relu(h, wl1_ref, bl1_ref)      # linear1+relu          (TB, 128)
    h = mm_relu(h, wl2_ref, bl2_ref)      # linear2+relu          (TB, 128)

    logits = (jnp.dot(h.astype(bf16), wl3_ref[...], preferred_element_type=f32)
              + bl3_ref[...])             # (TB, 128) f32; pad cols ~ -1e9

    # softmax(dim=1), max-subtracted; pad columns underflow to exactly 0.
    m = jnp.max(logits, axis=1, keepdims=True)
    e = jnp.exp(logits - m)
    inv = pl.reciprocal(jnp.sum(e, axis=1, keepdims=True), approx=True)
    o_ref[...] = e * inv


def cnn_forward(x, params, *, row_tile=2048):
    (cw1, cb1, cw2, cb2, cw3, cb3,
     lw1, lb1, lw2, lb2, lw3, lb3) = params
    B = x.shape[0]
    assert x.shape == (B, 1, L)
    f32, bf16 = jnp.float32, jnp.bfloat16
    epi_dtype = _epilogue_dtype()

    # ---- trace-time weight preparation (constant-folded under jit) ----
    eye_l = jnp.eye(L, dtype=f32)
    s1 = jnp.kron(eye_l, cw1[:, 0, 0][None, :])          # (L, 10L)
    bd2 = jnp.kron(eye_l, cw2[:, :, 0].T)                # (10L, 20L)
    bd3 = jnp.kron(eye_l, cw3[:, :, 0].T)                # (20L, 40L)
    b1t = jnp.tile(cb1, L)[None, :]                      # (1, 10L)
    b2t = jnp.tile(cb2, L)[None, :]                      # (1, 20L)
    b3t = jnp.tile(cb3, L)[None, :]                      # (1, 40L)

    # linear1: permute channel-major (c*L + l) -> row-major (l*40 + c), pad 120->128
    wl1 = jnp.transpose(lw1.reshape(HID1, 40, L), (2, 1, 0)).reshape(40 * L, HID1)
    wl1 = jnp.pad(wl1, ((0, 0), (0, HID1_PAD - HID1)))
    bl1 = jnp.pad(lb1, (0, HID1_PAD - HID1))[None, :]
    wl2 = jnp.pad(lw2.T, ((0, HID1_PAD - HID1), (0, HID2_PAD - HID2)))
    bl2 = jnp.pad(lb2, (0, HID2_PAD - HID2))[None, :]
    # linear3: pad output 27 -> 128; pad-bias = -1e9 so softmax pad lanes -> 0
    wl3 = jnp.pad(lw3.T, ((0, HID2_PAD - HID2), (0, OUT_PAD - OUT)))
    bl3 = jnp.pad(lb3, (0, OUT_PAD - OUT), constant_values=-1e9)[None, :]

    # ---- batch tiling (tiles multiple of 16 so bf16 input blocks stay aligned) ----
    x2d = x[:, 0, :].astype(bf16)                        # (B, L) bf16
    tb = min(row_tile, _round_up(B, 16))
    if B > 16:
        # guarantee >=2 grid steps so v7x's two TensorCores both get work
        tb = min(tb, _round_up(-(-B // 2), 16))
    b_pad = _round_up(B, tb)
    if b_pad != B:
        x2d = jnp.pad(x2d, ((0, b_pad - B), (0, 0)))
    grid = (b_pad // tb,)

    row_map = lambda i: (i, 0)
    pin_map = lambda i: (0, 0)

    def wspec(shape):
        return pl.BlockSpec(shape, pin_map)

    epi = lambda a: a.astype(epi_dtype)   # biases live in the epilogue dtype

    kernel = functools.partial(_cnn_fused_kernel, epi_dtype=epi_dtype)

    out = pl.pallas_call(
        kernel,
        out_shape=jax.ShapeDtypeStruct((b_pad, OUT_PAD), f32),
        grid=grid,
        in_specs=[
            pl.BlockSpec((tb, L), row_map),
            wspec((L, 10 * L)), wspec((1, 10 * L)),
            wspec((10 * L, 20 * L)), wspec((1, 20 * L)),
            wspec((20 * L, 40 * L)), wspec((1, 40 * L)),
            wspec((40 * L, HID1_PAD)), wspec((1, HID1_PAD)),
            wspec((HID1_PAD, HID2_PAD)), wspec((1, HID2_PAD)),
            wspec((HID2_PAD, OUT_PAD)), wspec((1, OUT_PAD)),
        ],
        out_specs=pl.BlockSpec((tb, OUT_PAD), row_map),
        compiler_params=pltpu.CompilerParams(
            dimension_semantics=("parallel",)),
    )(x2d,
      s1.astype(bf16), epi(b1t),
      bd2.astype(bf16), epi(b2t),
      bd3.astype(bf16), epi(b3t),
      wl1.astype(bf16), epi(bl1),
      wl2.astype(bf16), epi(bl2),
      wl3.astype(bf16), bl3.astype(f32))

    return out[:B, :OUT]


def init_params(key):
    # Deterministic, PyTorch-default-style U(-1/sqrt(fan_in), 1/sqrt(fan_in)).
    ks = jax.random.split(key, 12)

    def u(k, shape, fan_in):
        bound = 1.0 / (fan_in ** 0.5)
        return jax.random.uniform(k, shape, jnp.float32, -bound, bound)

    cw1 = u(ks[0], (10, 1, 1), 1);     cb1 = u(ks[1], (10,), 1)
    cw2 = u(ks[2], (20, 10, 1), 10);   cb2 = u(ks[3], (20,), 10)
    cw3 = u(ks[4], (40, 20, 1), 20);   cb3 = u(ks[5], (40,), 20)
    lw1 = u(ks[6], (HID1, 40 * L), 40 * L); lb1 = u(ks[7], (HID1,), 40 * L)
    lw2 = u(ks[8], (HID2, HID1), HID1);     lb2 = u(ks[9], (HID2,), HID1)
    lw3 = u(ks[10], (OUT, HID2), HID2);     lb3 = u(ks[11], (OUT,), HID2)
    return (cw1, cb1, cw2, cb2, cw3, cb3, lw1, lb1, lw2, lb2, lw3, lb3)


if __name__ == "__main__":
    key = jax.random.PRNGKey(0)
    kx, kp = jax.random.split(key)
    B = 2
    x = jax.random.normal(kx, (B, 1, L), jnp.float32)   # NCL, like PyTorch
    params = init_params(kp)

    out = jax.jit(cnn_forward)(x, params)
    out = jax.block_until_ready(out)

    assert out.shape == (B, OUT)
    assert bool(jnp.all(jnp.isfinite(out)))
    # softmax rows should sum to ~1 (approx reciprocal -> loose tolerance)
    assert bool(jnp.all(jnp.abs(jnp.sum(out, axis=1) - 1.0) < 1e-2))
    print("KERNEL_OK")
</pallas_src>

<mosaic_0001>
module attributes {stable_mosaic.version = 11 : i64} {
  func.func @_cnn_fused_kernel(%arg0: i32, %arg1: memref<16x16xbf16, #tpu.memory_space<vmem>>, %arg2: memref<16x160xbf16, #tpu.memory_space<vmem>>, %arg3: memref<1x160xbf16, #tpu.memory_space<vmem>>, %arg4: memref<160x320xbf16, #tpu.memory_space<vmem>>, %arg5: memref<1x320xbf16, #tpu.memory_space<vmem>>, %arg6: memref<320x640xbf16, #tpu.memory_space<vmem>>, %arg7: memref<1x640xbf16, #tpu.memory_space<vmem>>, %arg8: memref<640x128xbf16, #tpu.memory_space<vmem>>, %arg9: memref<1x128xbf16, #tpu.memory_space<vmem>>, %arg10: memref<128x128xbf16, #tpu.memory_space<vmem>>, %arg11: memref<1x128xbf16, #tpu.memory_space<vmem>>, %arg12: memref<128x128xbf16, #tpu.memory_space<vmem>>, %arg13: memref<1x128xf32, #tpu.memory_space<vmem>>, %arg14: memref<16x128xf32, #tpu.memory_space<vmem>>) attributes {dimension_semantics = [#tpu.dimension_semantics<parallel>], iteration_bounds = array<i64: 1>, scalar_prefetch = 0 : i64, scratch_operands = 0 : i64, tpu.core_type = #tpu.core_type<tc>, window_params = [{transform_indices = @transform_0, window_bounds = array<i64: 16, 16>}, {pipeline_mode = #tpu.pipeline_mode<synchronous>, transform_indices = @transform_1, window_bounds = array<i64: 16, 160>}, {pipeline_mode = #tpu.pipeline_mode<synchronous>, transform_indices = @transform_2, window_bounds = array<i64: 1, 160>}, {pipeline_mode = #tpu.pipeline_mode<synchronous>, transform_indices = @transform_3, window_bounds = array<i64: 160, 320>}, {pipeline_mode = #tpu.pipeline_mode<synchronous>, transform_indices = @transform_4, window_bounds = array<i64: 1, 320>}, {pipeline_mode = #tpu.pipeline_mode<synchronous>, transform_indices = @transform_5, window_bounds = array<i64: 320, 640>}, {pipeline_mode = #tpu.pipeline_mode<synchronous>, transform_indices = @transform_6, window_bounds = array<i64: 1, 640>}, {pipeline_mode = #tpu.pipeline_mode<synchronous>, transform_indices = @transform_7, window_bounds = array<i64: 640, 128>}, {pipeline_mode = #tpu.pipeline_mode<synchronous>, transform_indices = @transform_8, window_bounds = array<i64: 1, 128>}, {pipeline_mode = #tpu.pipeline_mode<synchronous>, transform_indices = @transform_9, window_bounds = array<i64: 128, 128>}, {pipeline_mode = #tpu.pipeline_mode<synchronous>, transform_indices = @transform_10, window_bounds = array<i64: 1, 128>}, {pipeline_mode = #tpu.pipeline_mode<synchronous>, transform_indices = @transform_11, window_bounds = array<i64: 128, 128>}, {pipeline_mode = #tpu.pipeline_mode<synchronous>, transform_indices = @transform_12, window_bounds = array<i64: 1, 128>}, {transform_indices = @transform_13, window_bounds = array<i64: 16, 128>}]} {
    %c0 = arith.constant 0 : index
    %c0_0 = arith.constant 0 : index
    %0 = vector.load %arg1[%c0, %c0_0] : memref<16x16xbf16, #tpu.memory_space<vmem>>, vector<16x16xbf16>
    %c0_1 = arith.constant 0 : index
    %c0_2 = arith.constant 0 : index
    %1 = vector.load %arg2[%c0_1, %c0_2] : memref<16x160xbf16, #tpu.memory_space<vmem>>, vector<16x160xbf16>
    %cst = arith.constant dense<0.000000e+00> : vector<16x160xf32>
    %2 = tpu.matmul %0, %1, %cst {dimension_numbers = #tpu.dot_dimension_numbers<[1], [0], [0], [1], [0, 0, 1, 1], [], []>} : vector<16x16xbf16>, vector<16x160xbf16>, vector<16x160xf32> -> vector<16x160xf32>
    %3 = arith.truncf %2 : vector<16x160xf32> to vector<16x160xbf16>
    %c0_3 = arith.constant 0 : index
    %c0_4 = arith.constant 0 : index
    %4 = vector.load %arg3[%c0_3, %c0_4] : memref<1x160xbf16, #tpu.memory_space<vmem>>, vector<1x160xbf16>
    %5 = vector.broadcast %4 : vector<1x160xbf16> to vector<16x160xbf16>
    %6 = arith.addf %3, %5 : vector<16x160xbf16>
    %cst_5 = arith.constant 0.000000e+00 : bf16
    %7 = vector.broadcast %cst_5 : bf16 to vector<16x160xbf16>
    %8 = arith.maximumf %6, %7 : vector<16x160xbf16>
    %c0_6 = arith.constant 0 : index
    %c0_7 = arith.constant 0 : index
    %9 = vector.load %arg4[%c0_6, %c0_7] : memref<160x320xbf16, #tpu.memory_space<vmem>>, vector<160x320xbf16>
    %cst_8 = arith.constant dense<0.000000e+00> : vector<16x320xf32>
    %10 = tpu.matmul %8, %9, %cst_8 {dimension_numbers = #tpu.dot_dimension_numbers<[1], [0], [0], [1], [0, 0, 1, 1], [], []>} : vector<16x160xbf16>, vector<160x320xbf16>, vector<16x320xf32> -> vector<16x320xf32>
    %11 = arith.truncf %10 : vector<16x320xf32> to vector<16x320xbf16>
    %c0_9 = arith.constant 0 : index
    %c0_10 = arith.constant 0 : index
    %12 = vector.load %arg5[%c0_9, %c0_10] : memref<1x320xbf16, #tpu.memory_space<vmem>>, vector<1x320xbf16>
    %13 = vector.broadcast %12 : vector<1x320xbf16> to vector<16x320xbf16>
    %14 = arith.addf %11, %13 : vector<16x320xbf16>
    %cst_11 = arith.constant 0.000000e+00 : bf16
    %15 = vector.broadcast %cst_11 : bf16 to vector<16x320xbf16>
    %16 = arith.maximumf %14, %15 : vector<16x320xbf16>
    %c0_12 = arith.constant 0 : index
    %c0_13 = arith.constant 0 : index
    %17 = vector.load %arg6[%c0_12, %c0_13] : memref<320x640xbf16, #tpu.memory_space<vmem>>, vector<320x640xbf16>
    %cst_14 = arith.constant dense<0.000000e+00> : vector<16x640xf32>
    %18 = tpu.matmul %16, %17, %cst_14 {dimension_numbers = #tpu.dot_dimension_numbers<[1], [0], [0], [1], [0, 0, 1, 1], [], []>} : vector<16x320xbf16>, vector<320x640xbf16>, vector<16x640xf32> -> vector<16x640xf32>
    %19 = arith.truncf %18 : vector<16x640xf32> to vector<16x640xbf16>
    %c0_15 = arith.constant 0 : index
    %c0_16 = arith.constant 0 : index
    %20 = vector.load %arg7[%c0_15, %c0_16] : memref<1x640xbf16, #tpu.memory_space<vmem>>, vector<1x640xbf16>
    %21 = vector.broadcast %20 : vector<1x640xbf16> to vector<16x640xbf16>
    %22 = arith.addf %19, %21 : vector<16x640xbf16>
    %cst_17 = arith.constant 0.000000e+00 : bf16
    %23 = vector.broadcast %cst_17 : bf16 to vector<16x640xbf16>
    %24 = arith.maximumf %22, %23 : vector<16x640xbf16>
    %c0_18 = arith.constant 0 : index
    %c0_19 = arith.constant 0 : index
    %25 = vector.load %arg8[%c0_18, %c0_19] : memref<640x128xbf16, #tpu.memory_space<vmem>>, vector<640x128xbf16>
    %cst_20 = arith.constant dense<0.000000e+00> : vector<16x128xf32>
    %26 = tpu.matmul %24, %25, %cst_20 {dimension_numbers = #tpu.dot_dimension_numbers<[1], [0], [0], [1], [0, 0, 1, 1], [], []>} : vector<16x640xbf16>, vector<640x128xbf16>, vector<16x128xf32> -> vector<16x128xf32>
    %27 = arith.truncf %26 : vector<16x128xf32> to vector<16x128xbf16>
    %c0_21 = arith.constant 0 : index
    %c0_22 = arith.constant 0 : index
    %28 = vector.load %arg9[%c0_21, %c0_22] : memref<1x128xbf16, #tpu.memory_space<vmem>>, vector<1x128xbf16>
    %29 = vector.broadcast %28 : vector<1x128xbf16> to vector<16x128xbf16>
    %30 = arith.addf %27, %29 : vector<16x128xbf16>
    %cst_23 = arith.constant 0.000000e+00 : bf16
    %31 = vector.broadcast %cst_23 : bf16 to vector<16x128xbf16>
    %32 = arith.maximumf %30, %31 : vector<16x128xbf16>
    %c0_24 = arith.constant 0 : index
    %c0_25 = arith.constant 0 : index
    %33 = vector.load %arg10[%c0_24, %c0_25] : memref<128x128xbf16, #tpu.memory_space<vmem>>, vector<128x128xbf16>
    %cst_26 = arith.constant dense<0.000000e+00> : vector<16x128xf32>
    %34 = tpu.matmul %32, %33, %cst_26 {dimension_numbers = #tpu.dot_dimension_numbers<[1], [0], [0], [1], [0, 0, 1, 1], [], []>} : vector<16x128xbf16>, vector<128x128xbf16>, vector<16x128xf32> -> vector<16x128xf32>
    %35 = arith.truncf %34 : vector<16x128xf32> to vector<16x128xbf16>
    %c0_27 = arith.constant 0 : index
    %c0_28 = arith.constant 0 : index
    %36 = vector.load %arg11[%c0_27, %c0_28] : memref<1x128xbf16, #tpu.memory_space<vmem>>, vector<1x128xbf16>
    %37 = vector.broadcast %36 : vector<1x128xbf16> to vector<16x128xbf16>
    %38 = arith.addf %35, %37 : vector<16x128xbf16>
    %cst_29 = arith.constant 0.000000e+00 : bf16
    %39 = vector.broadcast %cst_29 : bf16 to vector<16x128xbf16>
    %40 = arith.maximumf %38, %39 : vector<16x128xbf16>
    %c0_30 = arith.constant 0 : index
    %c0_31 = arith.constant 0 : index
    %41 = vector.load %arg12[%c0_30, %c0_31] : memref<128x128xbf16, #tpu.memory_space<vmem>>, vector<128x128xbf16>
    %cst_32 = arith.constant dense<0.000000e+00> : vector<16x128xf32>
    %42 = tpu.matmul %40, %41, %cst_32 {dimension_numbers = #tpu.dot_dimension_numbers<[1], [0], [0], [1], [0, 0, 1, 1], [], []>} : vector<16x128xbf16>, vector<128x128xbf16>, vector<16x128xf32> -> vector<16x128xf32>
    %c0_33 = arith.constant 0 : index
    %c0_34 = arith.constant 0 : index
    %43 = vector.load %arg13[%c0_33, %c0_34] : memref<1x128xf32, #tpu.memory_space<vmem>>, vector<1x128xf32>
    %44 = vector.broadcast %43 : vector<1x128xf32> to vector<16x128xf32>
    %45 = arith.addf %42, %44 : vector<16x128xf32>
    %cst_35 = arith.constant dense<0xFF800000> : vector<16xf32>
    %46 = vector.multi_reduction <maximumf>, %45, %cst_35 [1] : vector<16x128xf32> to vector<16xf32>
    %47 = vector.shape_cast %46 : vector<16xf32> to vector<16x1xf32>
    %48 = vector.broadcast %47 : vector<16x1xf32> to vector<16x128xf32>
    %49 = arith.subf %45, %48 : vector<16x128xf32>
    %50 = math.exp %49 : vector<16x128xf32>
    %cst_36 = arith.constant dense<0.000000e+00> : vector<16xf32>
    %51 = vector.multi_reduction <add>, %50, %cst_36 [1] : vector<16x128xf32> to vector<16xf32>
    %52 = vector.shape_cast %51 : vector<16xf32> to vector<16x1xf32>
    %53 = tpu.reciprocal %52 {approx = true} : vector<16x1xf32> -> vector<16x1xf32>
    %54 = vector.broadcast %53 : vector<16x1xf32> to vector<16x128xf32>
    %55 = arith.mulf %50, %54 : vector<16x128xf32>
    %c0_37 = arith.constant 0 : index
    %c0_38 = arith.constant 0 : index
    %56 = vector.load %arg14[%c0_37, %c0_38] : memref<16x128xf32, #tpu.memory_space<vmem>>, vector<16x128xf32>
    tpu.vector_store %arg14[%c0_37, %c0_38], %55 {strides = array<i32>} : memref<16x128xf32, #tpu.memory_space<vmem>>, vector<16x128xf32>,
    return
  }
  func.func @transform_0(%arg0: i32) -> (i32, i32) {
    %c0_i32 = arith.constant 0 : i32
    %c0_i32_0 = arith.constant 0 : i32
    return %arg0, %c0_i32 : i32, i32
  }
  func.func @transform_1(%arg0: i32) -> (i32, i32) {
    %c0_i32 = arith.constant 0 : i32
    %c0_i32_0 = arith.constant 0 : i32
    %c0_i32_1 = arith.constant 0 : i32
    return %c0_i32, %c0_i32_0 : i32, i32
  }
  func.func @transform_2(%arg0: i32) -> (i32, i32) {
    %c0_i32 = arith.constant 0 : i32
    %c0_i32_0 = arith.constant 0 : i32
    %c0_i32_1 = arith.constant 0 : i32
    return %c0_i32, %c0_i32_0 : i32, i32
  }
  func.func @transform_3(%arg0: i32) -> (i32, i32) {
    %c0_i32 = arith.constant 0 : i32
    %c0_i32_0 = arith.constant 0 : i32
    %c0_i32_1 = arith.constant 0 : i32
    return %c0_i32, %c0_i32_0 : i32, i32
  }
  func.func @transform_4(%arg0: i32) -> (i32, i32) {
    %c0_i32 = arith.constant 0 : i32
    %c0_i32_0 = arith.constant 0 : i32
    %c0_i32_1 = arith.constant 0 : i32
    return %c0_i32, %c0_i32_0 : i32, i32
  }
  func.func @transform_5(%arg0: i32) -> (i32, i32) {
    %c0_i32 = arith.constant 0 : i32
    %c0_i32_0 = arith.constant 0 : i32
    %c0_i32_1 = arith.constant 0 : i32
    return %c0_i32, %c0_i32_0 : i32, i32
  }
  func.func @transform_6(%arg0: i32) -> (i32, i32) {
    %c0_i32 = arith.constant 0 : i32
    %c0_i32_0 = arith.constant 0 : i32
    %c0_i32_1 = arith.constant 0 : i32
    return %c0_i32, %c0_i32_0 : i32, i32
  }
  func.func @transform_7(%arg0: i32) -> (i32, i32) {
    %c0_i32 = arith.constant 0 : i32
    %c0_i32_0 = arith.constant 0 : i32
    %c0_i32_1 = arith.constant 0 : i32
    return %c0_i32, %c0_i32_0 : i32, i32
  }
  func.func @transform_8(%arg0: i32) -> (i32, i32) {
    %c0_i32 = arith.constant 0 : i32
    %c0_i32_0 = arith.constant 0 : i32
    %c0_i32_1 = arith.constant 0 : i32
    return %c0_i32, %c0_i32_0 : i32, i32
  }
  func.func @transform_9(%arg0: i32) -> (i32, i32) {
    %c0_i32 = arith.constant 0 : i32
    %c0_i32_0 = arith.constant 0 : i32
    %c0_i32_1 = arith.constant 0 : i32
    return %c0_i32, %c0_i32_0 : i32, i32
  }
  func.func @transform_10(%arg0: i32) -> (i32, i32) {
    %c0_i32 = arith.constant 0 : i32
    %c0_i32_0 = arith.constant 0 : i32
    %c0_i32_1 = arith.constant 0 : i32
    return %c0_i32, %c0_i32_0 : i32, i32
  }
  func.func @transform_11(%arg0: i32) -> (i32, i32) {
    %c0_i32 = arith.constant 0 : i32
    %c0_i32_0 = arith.constant 0 : i32
    %c0_i32_1 = arith.constant 0 : i32
    return %c0_i32, %c0_i32_0 : i32, i32
  }
  func.func @transform_12(%arg0: i32) -> (i32, i32) {
    %c0_i32 = arith.constant 0 : i32
    %c0_i32_0 = arith.constant 0 : i32
    %c0_i32_1 = arith.constant 0 : i32
    return %c0_i32, %c0_i32_0 : i32, i32
  }
  func.func @transform_13(%arg0: i32) -> (i32, i32) {
    %c0_i32 = arith.constant 0 : i32
    %c0_i32_0 = arith.constant 0 : i32
    return %arg0, %c0_i32 : i32, i32
  }
}

</mosaic_0001>

<bundles_post_ra>
// kernel: cnn_forward.1
= control target key start
LH: loop header
LB: loop body
LE: loop exit
PB: predicated region body
PF: predicated region fallthrough
CT: control target
= control target key end

     0   :  { %vm64_vm0 = vcmask 130048   ;;  %vm331_vm1 = vcmask 261120   ;;  %vm1112_vm2 = vcmask 523264   ;;  %s4104_s1 = inlined_call_operand.vmem [shape: bf16[16,160], index: 1, kind: input, shape index: {}]   ;;  %s4105_s0 = inlined_call_operand.vmem [shape: bf16[16,16], index: 0, kind: input, shape index: {}]   ;;  %s4106_s3 = inlined_call_operand.vmem [shape: bf16[160,320], index: 3, kind: input, shape index: {}]   ;;  %s4107_s2 = inlined_call_operand.vmem [shape: bf16[1,160], index: 2, kind: input, shape index: {}]   ;;  %s4108_s4 = inlined_call_operand.vmem [shape: bf16[1,320], index: 4, kind: input, shape index: {}]   ;;  %s4109_s5 = inlined_call_operand.vmem [shape: bf16[320,640], index: 5, kind: input, shape index: {}]   ;;  %s4110_s6 = inlined_call_operand.vmem [shape: bf16[1,640], index: 6, kind: input, shape index: {}]   ;;  %s4111_s7 = inlined_call_operand.vmem [shape: bf16[640,128], index: 7, kind: input, shape index: {}]   ;;  %s4112_s9 = inlined_call_operand.vmem [shape: bf16[128,128], index: 9, kind: input, shape index: {}]   ;;  %s4113_s11 = inlined_call_operand.vmem [shape: bf16[128,128], index: 11, kind: input, shape index: {}]   ;;  %s4114_s8 = inlined_call_operand.vmem [shape: bf16[1,128], index: 8, kind: input, shape index: {}]   ;;  %s4115_s12 = inlined_call_operand.vmem [shape: f32[1,128], index: 12, kind: input, shape index: {}]   ;;  %s4116_s10 = inlined_call_operand.vmem [shape: bf16[1,128], index: 10, kind: input, shape index: {}]   ;;  %s4117_s13 = inlined_call_operand.vmem [shape: f32[16,128], index: 13, kind: output, shape index: {}]  }
   0x1   :  { %v2029_v0 = vld [vmem:[%s4104_s1] sm:$0xf]  ;;  %v2791_v1 = vld [vmem:[%s4104_s1 + $0x4] sm:$0xf0]  ;;  %v2790_v2 = vld [vmem:[%s4104_s1 + $0x4] sm:$0xf] }
   0x2   :  { %v2030_v3 = vor.u32 %v2791_v1, %v2029_v0  ;;  %v2031_v4 = vld [vmem:[%s4104_s1 + $0x8] sm:$0xf0]  ;;  %v2789_v5 = vld [vmem:[%s4105_s0] sm:$0xff]  ;;  %v2123_v6 = vld [vmem:[%s4106_s3 + $0xa8] sm:$0xf] }
   0x3   :  { %v2034_v7 = vor.u32 %v2790_v2, %v2031_v4  ;;  %v2814_v8 = vld [vmem:[%s4106_s3 + $0xb0] sm:$0xf0]  ;;  %v2131_v9 = vld [vmem:[%s4106_s3 + $0xb0] sm:$0xf]  ;;  %v2815_v10 = vld [vmem:[%s4106_s3 + $0xb8] sm:$0xf0] }
   0x4   :  { %75 = vmatpush.bf16.msra.mxu0 %v2030_v3  ;;  %v2124_v11 = vor.u32 %v2814_v8, %v2123_v6  ;;  %v2132_v12 = vor.u32 %v2815_v10, %v2131_v9  ;;  %v2111_v13 = vld [vmem:[%s4106_s3 + $0x90] sm:$0xf]  ;;  %v2811_v14 = vld [vmem:[%s4106_s3 + $0x98] sm:$0xf0]  ;;  %v2119_v15 = vld [vmem:[%s4106_s3 + $0x98] sm:$0xf] }
   0x5   :  { %89 = vmatpush.bf16.msra.mxu1 %v2034_v7  ;;  %v2812_v16 = vld [vmem:[%s4106_s3 + $0xa0] sm:$0xf0]  ;;  %v2112_v17 = vor.u32 %v2811_v14, %v2111_v13  ;;  %v2099_v19 = vld [vmem:[%s4106_s3 + $0x78] sm:$0xf]  ;;  %v2107_v22 = vld [vmem:[%s4106_s3 + $0x80] sm:$0xf] }
   0x6   :  { %335 = vmatpush.bf16.msra.mxu2 %v2124_v11  ;;  %391 = vmatpush.bf16.msra.mxu3 %v2132_v12  ;;  %v2120_v18 = vor.u32 %v2812_v16, %v2119_v15  ;;  %v2808_v20 = vld [vmem:[%s4106_s3 + $0x80] sm:$0xf0]  ;;  %v2147_v21 = vld [vmem:[%s4106_s3 + $0xd8] sm:$0xf]  ;;  %v2809_v23 = vld [vmem:[%s4106_s3 + $0x88] sm:$0xf0] }
   0x7   :  { %2035 = vmatmul.msk.bf16.vlgmr.msra.gmra.mxu0 %vm64_vm0, %v2789_v5  ;;  %v2820_v24 = vld [vmem:[%s4106_s3 + $0xe0] sm:$0xf0]  ;;  %v2100_v26 = vor.u32 %v2808_v20, %v2099_v19  ;;  %v2108_v27 = vor.u32 %v2809_v23, %v2107_v22  ;;  %v98_v28 = vld [vmem:[%s4107_s2] sm:$0x3]  ;;  %v2805_v30 = vld [vmem:[%s4106_s3 + $0x68] sm:$0xf0] }
   0x8   :  { %2036 = vmatmul.msk.bf16.vlgmr.msra.gmra.mxu1 %vm64_vm0, %v2789_v5  ;;  %v2148_v25 = vor.u32 %v2820_v24, %v2147_v21  ;;  %100 = vst [vmem:[#allocation1] ss:$9 sm:$0xff] %v98_v28  ;;  %v2087_v29 = vld [vmem:[%s4106_s3 + $0x60] sm:$0xf]  ;;  %v2095_v31 = vld [vmem:[%s4106_s3 + $0x68] sm:$0xf] }
   0x9   :  { %v2088_v32 = vor.u32 %v2805_v30, %v2087_v29  ;;  %v2806_v33 = vld [vmem:[%s4106_s3 + $0x70] sm:$0xf0]  ;;  %v2135_v35 = vld [vmem:[%s4106_s3 + $0xc0] sm:$0xf]  ;;  %v2817_v36 = vld [vmem:[%s4106_s3 + $0xc8] sm:$0xf0] }
   0xa   :  { %336 = vmatpush.bf16.msra.mxu2 %v2112_v17  ;;  %392 = vmatpush.bf16.msra.mxu3 %v2120_v18  ;;  %v2096_v34 = vor.u32 %v2806_v33, %v2095_v31  ;;  %v2136_v37 = vor.u32 %v2817_v36, %v2135_v35  ;;  %v2075_v38 = vld [vmem:[%s4106_s3 + $0x48] sm:$0xf]  ;;  %v2802_v39 = vld [vmem:[%s4106_s3 + $0x50] sm:$0xf0]  ;;  %v2813_v41 = vld [vmem:[%s4106_s3 + $0xac] sm:$0xf] }
   0xb   :  { %355 = vmatpush.bf16.msrb.mxu0 %v2148_v25  ;;  %v2076_v40 = vor.u32 %v2802_v39, %v2075_v38  ;;  %v2125_v42 = vld [vmem:[%s4106_s3 + $0xb4] sm:$0xf0]  ;;  %v2083_v43 = vld [vmem:[%s4106_s3 + $0x50] sm:$0xf]  ;;  %v2803_v45 = vld [vmem:[%s4106_s3 + $0x58] sm:$0xf0] }
   0xc   :  { %v2128_v44 = vor.u32 %v2813_v41, %v2125_v42  ;;  %v2084_v46 = vor.u32 %v2803_v45, %v2083_v43  ;;  %v2063_v47 = vld [vmem:[%s4106_s3 + $0x30] sm:$0xf]  ;;  %v2799_v48 = vld [vmem:[%s4106_s3 + $0x38] sm:$0xf0]  ;;  %v2810_v49 = vld [vmem:[%s4106_s3 + $0x94] sm:$0xf] }
   0xd   :  { %v2064_v50 = vor.u32 %v2799_v48, %v2063_v47  ;;  %v2113_v51 = vld [vmem:[%s4106_s3 + $0x9c] sm:$0xf0]  ;;  %v2071_v52 = vld [vmem:[%s4106_s3 + $0x38] sm:$0xf]  ;;  %v2800_v53 = vld [vmem:[%s4106_s3 + $0x40] sm:$0xf0] }
   0xe   :  { %337 = vmatpush.bf16.msra.mxu2 %v2100_v26  ;;  %393 = vmatpush.bf16.msra.mxu3 %v2108_v27  ;;  %v423_v56 = vld [vmem:[%s4108_s4] sm:$0x7]  ;;  %v2116_v57 = vor.u32 %v2810_v49, %v2113_v51  ;;  %v2072_v58 = vor.u32 %v2800_v53, %v2071_v52  ;;  %v2051_v59 = vld [vmem:[%s4106_s3 + $0x18] sm:$0xf]  ;;  %v2796_v60 = vld [vmem:[%s4106_s3 + $0x20] sm:$0xf0] }
   0xf   :  { %356 = vmatpush.bf16.msrb.mxu0 %v2136_v37  ;;  %v3173_v54 = vld [vmem:[#allocation1] sm:$0xff]  ;;  %v3175_v55 = vld [vmem:[#allocation1 + $0x9] sm:$0xff]  ;;  %v2807_v61 = vld [vmem:[%s4106_s3 + $0x7c] sm:$0xf]  ;;  %v2052_v62 = vor.u32 %v2796_v60, %v2051_v59 }
  0x10   :  { %425 = vst [vmem:[#allocation1] ss:$9 sm:$0xff] %v423_v56  ;;  %v2101_v63 = vld [vmem:[%s4106_s3 + $0x84] sm:$0xf0]  ;;  %v2819_v0 = vld [vmem:[%s4106_s3 + $0xdc] sm:$0xf]  ;;  %v103_v37 = vpack.i.b16 %v3173_v54, %v3173_v54  ;;  %v106_v38 = vpack.i.b16 %v3175_v55, %v3175_v55 }
  0x11   :  { %v2149_v1 = vld [vmem:[%s4106_s3 + $0xe4] sm:$0xf0]  ;;  %v2104_v2 = vor.u32 %v2807_v61, %v2101_v63  ;;  %v2059_v4 = vld [vmem:[%s4106_s3 + $0x20] sm:$0xf]  ;;  %v2797_v5 = vld [vmem:[%s4106_s3 + $0x28] sm:$0xf0] }
  0x12   :  { %338 = vmatpush.bf16.msra.mxu2 %v2088_v32  ;;  %394 = vmatpush.bf16.msra.mxu3 %v2096_v34  ;;  %v2152_v3 = vor.u32 %v2819_v0, %v2149_v1  ;;  %v2060_v6 = vor.u32 %v2797_v5, %v2059_v4  ;;  %v2039_v7 = vld [vmem:[%s4106_s3] sm:$0xf]  ;;  %v2793_v8 = vld [vmem:[%s4106_s3 + $0x8] sm:$0xf0]  ;;  %v2804_v9 = vld [vmem:[%s4106_s3 + $0x64] sm:$0xf] }
  0x13   :  { %363 = vmatpush.bf16.msra.mxu0 %v2128_v44  ;;  %v2040_v10 = vor.u32 %v2793_v8, %v2039_v7  ;;  %v2089_v11 = vld [vmem:[%s4106_s3 + $0x6c] sm:$0xf0]  ;;  %v2816_v12 = vld [vmem:[%s4106_s3 + $0xc4] sm:$0xf]  ;;  %v2047_v16 = vld [vmem:[%s4106_s3 + $0x8] sm:$0xf] }
  0x14   :  { %383 = vmatpush.bf16.msrb.mxu1 %v2152_v3  ;;  %v2137_v13 = vld [vmem:[%s4106_s3 + $0xcc] sm:$0xf0]  ;;  %v2092_v14 = vor.u32 %v2804_v9, %v2089_v11  ;;  %v2794_v17 = vld [vmem:[%s4106_s3 + $0x10] sm:$0xf0]  ;;  %v2801_v19 = vld [vmem:[%s4106_s3 + $0x4c] sm:$0xf] }
  0x15   :  { %v2140_v15 = vor.u32 %v2816_v12, %v2137_v13  ;;  %v2048_v18 = vor.u32 %v2794_v17, %v2047_v16  ;;  %v2077_v20 = vld [vmem:[%s4106_s3 + $0x54] sm:$0xf0]  ;;  %v2798_v22 = vld [vmem:[%s4106_s3 + $0x34] sm:$0xf]  ;;  %v2065_v23 = vld [vmem:[%s4106_s3 + $0x3c] sm:$0xf0] }
  0x16   :  { %339 = vmatpush.bf16.msra.mxu2 %v2076_v40  ;;  %395 = vmatpush.bf16.msra.mxu3 %v2084_v46  ;;  %v2080_v21 = vor.u32 %v2801_v19, %v2077_v20  ;;  %v2068_v24 = vor.u32 %v2798_v22, %v2065_v23  ;;  %v2155_v25 = vld [vmem:[%s4106_s3 + $0xe0] sm:$0xf]  ;;  %v2821_v26 = vld [vmem:[%s4106_s3 + $0xe8] sm:$0xf0]  ;;  %v2795_v27 = vld [vmem:[%s4106_s3 + $0x1c] sm:$0xf] }
  0x17   :  { %364 = vmatpush.bf16.msra.mxu0 %v2116_v57  ;;  %v2053_v28 = vld [vmem:[%s4106_s3 + $0x24] sm:$0xf0]  ;;  %v2156_v29 = vor.u32 %v2821_v26, %v2155_v25  ;;  %v2818_v31 = vld [vmem:[%s4106_s3 + $0xd0] sm:$0xf0]  ;;  %v2792_v34 = vld [vmem:[%s4106_s3 + $0x4] sm:$0xf] }
  0x18   :  { %384 = vmatpush.bf16.msrb.mxu1 %v2140_v15  ;;  %v2143_v30 = vld [vmem:[%s4106_s3 + $0xc8] sm:$0xf]  ;;  %v2056_v33 = vor.u32 %v2795_v27, %v2053_v28  ;;  %v2041_v35 = vld [vmem:[%s4106_s3 + $0xc] sm:$0xf0]  ;;  %v105_v42 = vperm.slane %v103_v37, 0  ;;  %v108_v43 = vperm.slane %v106_v38, 0 }
  0x19   :  { %v2144_v32 = vor.u32 %v2818_v31, %v2143_v30  ;;  %v2044_v36 = vor.u32 %v2792_v34, %v2041_v35  ;;  %v2857_v44 = vld [vmem:[%s4109_s5 + $0x11c] sm:$0xf]  ;;  %v2304_v45 = vld [vmem:[%s4109_s5 + $0x12c] sm:$0xf0]  ;;  %v2852_v47 = vld [vmem:[%s4109_s5 + $0xf4] sm:$0xf] }
  0x1a   :  { %340 = vmatpush.bf16.msra.mxu2 %v2064_v50  ;;  %396 = vmatpush.bf16.msra.mxu3 %v2072_v58  ;;  %v2307_v46 = vor.u32 %v2857_v44, %v2304_v45  ;;  %v2284_v48 = vld [vmem:[%s4109_s5 + $0x104] sm:$0xf0]  ;;  %v113_v51 = vunpack.c.l.bf16 %v105_v42  ;;  %v114_v52 = vunpack.c.l.bf16 %v108_v43  ;;  %v2847_v56 = vld [vmem:[%s4109_s5 + $0xcc] sm:$0xf]  ;;  %v2264_v57 = vld [vmem:[%s4109_s5 + $0xdc] sm:$0xf0] }
  0x1b   :  { %365 = vmatpush.bf16.msra.mxu0 %v2104_v2  ;;  %v2287_v54 = vor.u32 %v2852_v47, %v2284_v48  ;;  %v2267_v63 = vor.u32 %v2847_v56, %v2264_v57  ;;  %v2302_v0 = vld [vmem:[%s4109_s5 + $0x118] sm:$0xf]  ;;  %v2859_v1 = vld [vmem:[%s4109_s5 + $0x128] sm:$0xf0]  ;;  %v2842_v9 = vld [vmem:[%s4109_s5 + $0xa4] sm:$0xf] }
  0x1c   :  { %411 = vmatpush.bf16.msra.mxu1 %v2156_v29  ;;  %v2303_v2 = vor.u32 %v2859_v1, %v2302_v0  ;;  %v2462_v5 = vld [vmem:[%s4109_s5 + $0x258] sm:$0xf]  ;;  %v2894_v20 = vld [vmem:[%s4109_s5 + $0x240] sm:$0xf0]  ;;  %v2837_v22 = vld [vmem:[%s4109_s5 + $0x7c] sm:$0xf] }
  0x1d   :  { %v2542_v13 = vld [vmem:[%s4109_s5 + $0x2f8] sm:$0xf]  ;;  %v2224_v23 = vld [vmem:[%s4109_s5 + $0x8c] sm:$0xf0]  ;;  %v2422_v26 = vld [vmem:[%s4109_s5 + $0x208] sm:$0xf] }
  0x1e   :  { %341 = vmatpush.bf16.msra.mxu2 %v2052_v62  ;;  %397 = vmatpush.bf16.msra.mxu3 %v2060_v6  ;;  %v2899_v6 = vld [vmem:[%s4109_s5 + $0x268] sm:$0xf0]  ;;  %v2227_v25 = vor.u32 %v2837_v22, %v2224_v23  ;;  %v2889_v27 = vld [vmem:[%s4109_s5 + $0x218] sm:$0xf0]  ;;  %v2402_v29 = vld [vmem:[%s4109_s5 + $0x1e0] sm:$0xf] }
  0x1f   :  { %366 = vmatpush.bf16.msra.mxu0 %v2092_v14  ;;  %v2919_v14 = vld [vmem:[%s4109_s5 + $0x308] sm:$0xf0]  ;;  %v2463_v17 = vor.u32 %v2899_v6, %v2462_v5  ;;  %v2423_v28 = vor.u32 %v2889_v27, %v2422_v26  ;;  %v2884_v30 = vld [vmem:[%s4109_s5 + $0x1f0] sm:$0xf0]  ;;  %v2522_v35 = vld [vmem:[%s4109_s5 + $0x2d0] sm:$0xf] }
  0x20   :  { %412 = vmatpush.bf16.msra.mxu1 %v2144_v32  ;;  %v2403_v31 = vor.u32 %v2884_v30, %v2402_v29  ;;  %v2382_v32 = vld [vmem:[%s4109_s5 + $0x1b8] sm:$0xf]  ;;  %v2832_v37 = vld [vmem:[%s4109_s5 + $0x54] sm:$0xf]  ;;  %v2854_v42 = vld [vmem:[%s4109_s5 + $0x100] sm:$0xf0] }
  0x21   :  { %v2362_v43 = vld [vmem:[%s4109_s5 + $0x190] sm:$0xf]  ;;  %v2874_v45 = vld [vmem:[%s4109_s5 + $0x1a0] sm:$0xf0]  ;;  %v2909_v47 = vld [vmem:[%s4109_s5 + $0x2b8] sm:$0xf0] }
  0x22   :  { %342 = vmatpush.bf16.msra.mxu2 %v2040_v10  ;;  %398 = vmatpush.bf16.msra.mxu3 %v2048_v18  ;;  %v2244_v10 = vld [vmem:[%s4109_s5 + $0xb4] sm:$0xf0]  ;;  %v2442_v18 = vld [vmem:[%s4109_s5 + $0x230] sm:$0xf]  ;;  %v2363_v48 = vor.u32 %v2874_v45, %v2362_v43  ;;  %v2869_v57 = vld [vmem:[%s4109_s5 + $0x178] sm:$0xf0] }
  0x23   :  { %367 = vmatpush.bf16.msra.mxu0 %v2080_v21  ;;  %v2247_v19 = vor.u32 %v2842_v9, %v2244_v10  ;;  %v2543_v21 = vor.u32 %v2919_v14, %v2542_v13  ;;  %v2897_v0 = vld [vmem:[%s4109_s5 + $0x25c] sm:$0xf]  ;;  %v2322_v9 = vld [vmem:[%s4109_s5 + $0x140] sm:$0xf]  ;;  %v2860_v13 = vld [vmem:[%s4109_s5 + $0x130] sm:$0xf0] }
  0x24   :  { %v2222_v22 = vld [vmem:[%s4109_s5 + $0x78] sm:$0xf]  ;;  %v2839_v23 = vld [vmem:[%s4109_s5 + $0x88] sm:$0xf0]  ;;  %v2424_v29 = vld [vmem:[%s4109_s5 + $0x21c] sm:$0xf0] }
  0x25   :  { %v2855_v26 = vld [vmem:[%s4109_s5 + $0x108] sm:$0xf0]  ;;  %v2430_v30 = vld [vmem:[%s4109_s5 + $0x210] sm:$0xf]  ;;  %v2182_v45 = vld [vmem:[%s4109_s5 + $0x28] sm:$0xf] }
  0x26   :  { %1158 = vmatpush.bf16.msrb.mxu3 %v2307_v46  ;;  %1116 = vmatpush.bf16.msrb.mxu2 %v2303_v2  ;;  %v2502_v46 = vld [vmem:[%s4109_s5 + $0x2a8] sm:$0xf]  ;;  %v2464_v2 = vld [vmem:[%s4109_s5 + $0x26c] sm:$0xf0] }
  0x27   :  { %368 = vmatpush.bf16.msra.mxu0 %v2068_v24  ;;  %v2443_v24 = vor.u32 %v2894_v20, %v2442_v18  ;;  %v2467_v5 = vor.u32 %v2897_v0, %v2464_v2  ;;  %v2450_v18 = vld [vmem:[%s4109_s5 + $0x238] sm:$0xf]  ;;  %v2895_v20 = vld [vmem:[%s4109_s5 + $0x248] sm:$0xf0]  ;;  %v2544_v2 = vld [vmem:[%s4109_s5 + $0x30c] sm:$0xf0] }
  0x2a   :  { %1159 = vmatpush.bf16.msrb.mxu3 %v2287_v54  ;;  %v2849_v54 = vld [vmem:[%s4109_s5 + $0xd8] sm:$0xf0] }
  0x2b   :  { %369 = vmatpush.bf16.msra.mxu0 %v2056_v33  ;;  %v2879_v33 = vld [vmem:[%s4109_s5 + $0x1c8] sm:$0xf0] }
  0x2c   :  { %v2383_v34 = vor.u32 %v2879_v33, %v2382_v32  ;;  %v2890_v32 = vld [vmem:[%s4109_s5 + $0x220] sm:$0xf0] }
  0x2d   :  { %v2431_v33 = vor.u32 %v2890_v32, %v2430_v30  ;;  %v2862_v32 = vld [vmem:[%s4109_s5 + $0x144] sm:$0xf] }
  0x2e   :  { %1160 = vmatpush.bf16.msrb.mxu3 %v2267_v63  ;;  %v2164_v63 = vld [vmem:[%s4109_s5 + $0x14] sm:$0xf0] }
  0x2f   :  { %370 = vmatpush.bf16.msra.mxu0 %v2044_v36  ;;  %v2914_v36 = vld [vmem:[%s4109_s5 + $0x2e0] sm:$0xf0] }
  0x30   :  { %v2523_v38 = vor.u32 %v2914_v36, %v2522_v35  ;;  %v2834_v35 = vld [vmem:[%s4109_s5 + $0x60] sm:$0xf0]  ;;  %v2270_v36 = vld [vmem:[%s4109_s5 + $0xd0] sm:$0xf] }
  0x32   :  { %1161 = vmatpush.bf16.msrb.mxu3 %v2247_v19 }
  0x36   :  { %1162 = vmatpush.bf16.msrb.mxu3 %v2227_v25  ;;  %v2290_v25 = vld [vmem:[%s4109_s5 + $0xf8] sm:$0xf] }
  0x37   :  { %v2291_v27 = vor.u32 %v2855_v26, %v2290_v25 }
  0x84   :  { %v77_v39 = vpop.f32.mrf.mxu0 }
  0x85   :  { %v91_v40 = vpop.f32.mrf.mxu1 }
  0x86   :  { %v96_v41 = vpack.c.bf16 %v91_v40, %v77_v39  ;;  %v2204_v39 = vld [vmem:[%s4109_s5 + $0x64] sm:$0xf0] }
  0x87   :  { %v2207_v40 = vor.u32 %v2832_v37, %v2204_v39  ;;  %v2882_v39 = vld [vmem:[%s4109_s5 + $0x1e4] sm:$0xf] }
  0x88   :  { %v109_v49 = vunpack.c.l.bf16 %v96_v41  ;;  %v110_v50 = vunpack.c.h.bf16 %v96_v41  ;;  %v2282_v41 = vld [vmem:[%s4109_s5 + $0xf0] sm:$0xf] }
  0x89   :  { %1163 = vmatpush.bf16.msrb.mxu3 %v2207_v40  ;;  %v2283_v44 = vor.u32 %v2854_v42, %v2282_v41  ;;  %v2404_v40 = vld [vmem:[%s4109_s5 + $0x1f4] sm:$0xf0]  ;;  %v2410_v42 = vld [vmem:[%s4109_s5 + $0x1e8] sm:$0xf] }
  0x8a   :  { %v115_v59 = vadd.f32 %v113_v51, %v109_v49  ;;  %v116_v60 = vadd.f32 %v114_v52, %v110_v50  ;;  %v2503_v49 = vor.u32 %v2909_v47, %v2502_v46  ;;  %v2827_v50 = vld [vmem:[%s4109_s5 + $0x2c] sm:$0xf]  ;;  %v2407_v43 = vor.u32 %v2882_v39, %v2404_v40  ;;  %v2829_v46 = vld [vmem:[%s4109_s5 + $0x38] sm:$0xf0]  ;;  %v2902_v39 = vld [vmem:[%s4109_s5 + $0x284] sm:$0xf] }
  0x8b   :  { %1117 = vmatpush.bf16.msrb.mxu2 %v2283_v44  ;;  %v2885_v44 = vld [vmem:[%s4109_s5 + $0x1f8] sm:$0xf0]  ;;  %v2484_v40 = vld [vmem:[%s4109_s5 + $0x294] sm:$0xf0] }
  0x8c   :  { %v79_v53 = vpop.f32.mrf.mxu0  ;;  %v125_v7 = vmax.f32 %v115_v59, 0.0  ;;  %v126_v8 = vmax.f32 %v116_v60, 0.0  ;;  %v2904_v59 = vld [vmem:[%s4109_s5 + $0x290] sm:$0xf0]  ;;  %v2411_v47 = vor.u32 %v2885_v44, %v2410_v42  ;;  %v2170_v42 = vld [vmem:[%s4109_s5 + $0x8] sm:$0xf] }
  0x8d   :  { %v93_v55 = vpop.f32.mrf.mxu1 }
  0x8e   :  { %v97_v58 = vpack.c.bf16 %v93_v55, %v79_v53  ;;  %v2262_v53 = vld [vmem:[%s4109_s5 + $0xc8] sm:$0xf] }
  0x8f   :  { %v2342_v55 = vld [vmem:[%s4109_s5 + $0x168] sm:$0xf]  ;;  %v2263_v56 = vor.u32 %v2849_v54, %v2262_v53  ;;  %v2384_v53 = vld [vmem:[%s4109_s5 + $0x1cc] sm:$0xf0]  ;;  %v2390_v54 = vld [vmem:[%s4109_s5 + $0x1c0] sm:$0xf] }
  0x90   :  { %v111_v61 = vunpack.c.l.bf16 %v97_v58  ;;  %v112_v62 = vunpack.c.h.bf16 %v97_v58  ;;  %v2482_v58 = vld [vmem:[%s4109_s5 + $0x280] sm:$0xf]  ;;  %v2343_v60 = vor.u32 %v2869_v57, %v2342_v55 }
  0x91   :  { %1118 = vmatpush.bf16.msrb.mxu2 %v2263_v56  ;;  %v3514_v55 = vld [vmem:[#allocation1] sm:$0xff]  ;;  %v3516_v56 = vld [vmem:[#allocation1 + $0x9] sm:$0xff] }
  0x92   :  { %v117_v3 = vadd.f32 %v113_v51, %v111_v61  ;;  %v118_v4 = vadd.f32 %v114_v52, %v112_v62  ;;  %v2184_v51 = vld [vmem:[%s4109_s5 + $0x3c] sm:$0xf0]  ;;  %v2483_v61 = vor.u32 %v2904_v59, %v2482_v58  ;;  %v2822_v62 = vld [vmem:[%s4109_s5 + $0x4] sm:$0xf]  ;;  %v2880_v58 = vld [vmem:[%s4109_s5 + $0x1d0] sm:$0xf0] }
  0x93   :  { %v2187_v52 = vor.u32 %v2827_v50, %v2184_v51  ;;  %v2167_v1 = vor.u32 %v2822_v62, %v2164_v63  ;;  %v2183_v50 = vor.u32 %v2829_v46, %v2182_v45  ;;  %v3521_v59 = vld [vmem:[#allocation1 + $0x12] sm:$0xff]  ;;  %v1332_v63 = vld [vmem:[%s4110_s6] sm:$0x1f] }
  0x94   :  { %v127_v11 = vmax.f32 %v117_v3, 0.0  ;;  %v128_v12 = vmax.f32 %v118_v4, 0.0  ;;  %v2470_v3 = vld [vmem:[%s4109_s5 + $0x260] sm:$0xf]  ;;  %v2900_v4 = vld [vmem:[%s4109_s5 + $0x270] sm:$0xf0] }
  0x95   :  { %1164 = vmatpush.bf16.msrb.mxu3 %v2187_v52  ;;  %v2471_v6 = vor.u32 %v2900_v4, %v2470_v3  ;;  %v2877_v52 = vld [vmem:[%s4109_s5 + $0x1bc] sm:$0xf]  ;;  %v2824_v62 = vld [vmem:[%s4109_s5 + $0x10] sm:$0xf0]  ;;  %1334 = vst [vmem:[#allocation1] ss:$9 sm:$0xff] %v1332_v63 }
  0x96   :  { %v130_v15 = vpack.c.bf16 %v128_v12, %v126_v8  ;;  %v129_v16 = vpack.c.bf16 %v127_v11, %v125_v7  ;;  %v2242_v7 = vld [vmem:[%s4109_s5 + $0xa0] sm:$0xf]  ;;  %v2844_v8 = vld [vmem:[%s4109_s5 + $0xb0] sm:$0xf0]  ;;  %v2387_v57 = vor.u32 %v2877_v52, %v2384_v53 }
  0x97   :  { %v2243_v10 = vor.u32 %v2844_v8, %v2242_v7  ;;  %v2864_v11 = vld [vmem:[%s4109_s5 + $0x150] sm:$0xf0]  ;;  %v2310_v12 = vld [vmem:[%s4109_s5 + $0x120] sm:$0xf]  ;;  %v2364_v8 = vld [vmem:[%s4109_s5 + $0x1a4] sm:$0xf0] }
  0x98   :  { %343 = vmatmul.bf16.vlgmr.msra.gmra.mxu2 %v129_v16  ;;  %2157 = vmatmul.msk.bf16.vlgmr.msrb.gmra.mxu0 %vm331_vm1, %v130_v15  ;;  %v2323_v14 = vor.u32 %v2864_v11, %v2322_v9  ;;  %v2230_v4 = vld [vmem:[%s4109_s5 + $0x80] sm:$0xf]  ;;  %v2872_v7 = vld [vmem:[%s4109_s5 + $0x194] sm:$0xf]  ;;  %v2370_v9 = vld [vmem:[%s4109_s5 + $0x198] sm:$0xf] }
  0x99   :  { %2158 = vmatmul.msk.bf16.vlgmr.msrb.gmra.mxu1 %vm331_vm1, %v130_v15  ;;  %399 = vmatmul.bf16.vlgmr.msra.gmra.mxu3 %v129_v16  ;;  %v2875_v11 = vld [vmem:[%s4109_s5 + $0x1a8] sm:$0xf0] }
  0x9a   :  { %1130 = vmatpush.bf16.msrb.mxu0 %v2463_v17  ;;  %1148 = vmatpush.bf16.msrb.mxu1 %v2543_v21  ;;  %v2444_v17 = vld [vmem:[%s4109_s5 + $0x244] sm:$0xf0]  ;;  %v2451_v21 = vor.u32 %v2895_v20, %v2450_v18  ;;  %v2867_v18 = vld [vmem:[%s4109_s5 + $0x16c] sm:$0xf] }
  0x9b   :  { %1165 = vmatpush.bf16.msrb.mxu3 %v2167_v1  ;;  %1119 = vmatpush.bf16.msrb.mxu2 %v2243_v10  ;;  %v2917_v1 = vld [vmem:[%s4109_s5 + $0x2fc] sm:$0xf]  ;;  %v2367_v10 = vor.u32 %v2872_v7, %v2364_v8 }
  0x9c   :  { %v2547_v3 = vor.u32 %v2917_v1, %v2544_v2 }
  0x9e   :  { %1131 = vmatpush.bf16.msrb.mxu0 %v2443_v24  ;;  %1149 = vmatpush.bf16.msrb.mxu1 %v2523_v38  ;;  %v2223_v24 = vor.u32 %v2839_v23, %v2222_v22  ;;  %v2850_v38 = vld [vmem:[%s4109_s5 + $0xe0] sm:$0xf0]  ;;  %v2350_v23 = vld [vmem:[%s4109_s5 + $0x170] sm:$0xf] }
  0x9f   :  { %1214 = vmatpush.bf16.msra.mxu3 %v2471_v6  ;;  %v2271_v41 = vor.u32 %v2850_v38, %v2270_v36  ;;  %v2330_v36 = vld [vmem:[%s4109_s5 + $0x148] sm:$0xf] }
  0xa0   :  { %1120 = vmatpush.bf16.msrb.mxu2 %v2223_v24  ;;  %v2870_v24 = vld [vmem:[%s4109_s5 + $0x180] sm:$0xf0] }
  0xa1   :  { %v2351_v26 = vor.u32 %v2870_v24, %v2350_v23  ;;  %v2318_v23 = vld [vmem:[%s4109_s5 + $0x128] sm:$0xf]  ;;  %v2861_v24 = vld [vmem:[%s4109_s5 + $0x138] sm:$0xf0] }
  0xa2   :  { %1132 = vmatpush.bf16.msrb.mxu0 %v2423_v28  ;;  %1150 = vmatpush.bf16.msrb.mxu1 %v2503_v49  ;;  %v2887_v28 = vld [vmem:[%s4109_s5 + $0x20c] sm:$0xf]  ;;  %v2845_v49 = vld [vmem:[%s4109_s5 + $0xb8] sm:$0xf0] }
  0xa3   :  { %1215 = vmatpush.bf16.msra.mxu3 %v2451_v21 }
  0xa6   :  { %1133 = vmatpush.bf16.msrb.mxu0 %v2403_v31  ;;  %1151 = vmatpush.bf16.msrb.mxu1 %v2483_v61  ;;  %v2427_v31 = vor.u32 %v2887_v28, %v2424_v29  ;;  %v2162_v61 = vld [vmem:[%s4109_s5] sm:$0xf]  ;;  %v2190_v29 = vld [vmem:[%s4109_s5 + $0x30] sm:$0xf] }
  0xa7   :  { %1216 = vmatpush.bf16.msra.mxu3 %v2431_v33  ;;  %v2163_v0 = vor.u32 %v2824_v62, %v2162_v61  ;;  %v2504_v28 = vld [vmem:[%s4109_s5 + $0x2bc] sm:$0xf0]  ;;  %v2324_v33 = vld [vmem:[%s4109_s5 + $0x154] sm:$0xf0] }
  0xa8   :  { %371 = vmatmul.bf16.vlgmr.msra.gmra.mxu0 %v129_v16  ;;  %v2892_v16 = vld [vmem:[%s4109_s5 + $0x234] sm:$0xf] }
  0xa9   :  { %2159 = vmatmul.msk.bf16.vlgmr.msra.gmra.mxu1 %vm331_vm1, %v130_v15  ;;  %v2311_v15 = vor.u32 %v2860_v13, %v2310_v12  ;;  %v2447_v19 = vor.u32 %v2892_v16, %v2444_v17  ;;  %v2371_v12 = vor.u32 %v2875_v11, %v2370_v9  ;;  %v2912_v13 = vld [vmem:[%s4109_s5 + $0x2d4] sm:$0xf]  ;;  %v2835_v17 = vld [vmem:[%s4109_s5 + $0x68] sm:$0xf0] }
  0xaa   :  { %1134 = vmatpush.bf16.msrb.mxu0 %v2383_v34  ;;  %1172 = vmatpush.bf16.msra.mxu1 %v2467_v5  ;;  %v2202_v34 = vld [vmem:[%s4109_s5 + $0x50] sm:$0xf]  ;;  %v2840_v5 = vld [vmem:[%s4109_s5 + $0x90] sm:$0xf0] }
  0xab   :  { %v2203_v37 = vor.u32 %v2834_v35, %v2202_v34  ;;  %1217 = vmatpush.bf16.msra.mxu3 %v2411_v47  ;;  %v2231_v6 = vor.u32 %v2840_v5, %v2230_v4  ;;  %v2327_v35 = vor.u32 %v2862_v32, %v2324_v33  ;;  %v2552_v33 = vld [vmem:[%s4109_s5 + $0x314] sm:$0xf0] }
  0xad   :  { %1121 = vmatpush.bf16.msrb.mxu2 %v2203_v37  ;;  %v2865_v37 = vld [vmem:[%s4109_s5 + $0x158] sm:$0xf0] }
  0xae   :  { %1135 = vmatpush.bf16.msrb.mxu0 %v2363_v48  ;;  %1173 = vmatpush.bf16.msra.mxu1 %v2447_v19  ;;  %v2250_v48 = vld [vmem:[%s4109_s5 + $0xa8] sm:$0xf]  ;;  %v2344_v19 = vld [vmem:[%s4109_s5 + $0x17c] sm:$0xf0]  ;;  %v2331_v38 = vor.u32 %v2865_v37, %v2330_v36 }
  0xaf   :  { %v2251_v51 = vor.u32 %v2845_v49, %v2250_v48  ;;  %v2347_v22 = vor.u32 %v2867_v18, %v2344_v19  ;;  %v2858_v19 = vld [vmem:[%s4109_s5 + $0x124] sm:$0xf] }
  0xb1   :  { %1122 = vmatpush.bf16.msrb.mxu2 %v2183_v50  ;;  %v429_v50 = vpack.i.b16 %v3514_v55, %v3514_v55 }
  0xb2   :  { %1136 = vmatpush.bf16.msrb.mxu0 %v2343_v60  ;;  %1174 = vmatpush.bf16.msra.mxu1 %v2427_v31  ;;  %v2391_v60 = vor.u32 %v2880_v58, %v2390_v54  ;;  %v2830_v31 = vld [vmem:[%s4109_s5 + $0x40] sm:$0xf0] }
  0xb3   :  { %v2191_v34 = vor.u32 %v2830_v31, %v2190_v29 }
  0xb4   :  { %1218 = vmatpush.bf16.msra.mxu3 %v2391_v60  ;;  %v431_v60 = vperm.slane %v429_v50, 0  ;;  %v2532_v50 = vld [vmem:[%s4109_s5 + $0x2ec] sm:$0xf0] }
  0xb5   :  { %1123 = vmatpush.bf16.msrb.mxu2 %v2163_v0 }
  0xb6   :  { %1137 = vmatpush.bf16.msrb.mxu0 %v2323_v14  ;;  %1175 = vmatpush.bf16.msra.mxu1 %v2407_v43  ;;  %v2524_v14 = vld [vmem:[%s4109_s5 + $0x2e4] sm:$0xf0]  ;;  %v2825_v43 = vld [vmem:[%s4109_s5 + $0x18] sm:$0xf0]  ;;  %v444_v2 = vunpack.c.l.bf16 %v431_v60  ;;  %v2278_v60 = vld [vmem:[%s4109_s5 + $0xd8] sm:$0xf] }
  0xb7   :  { %v2527_v16 = vor.u32 %v2912_v13, %v2524_v14  ;;  %v2171_v45 = vor.u32 %v2825_v43, %v2170_v42 }
  0xb8   :  { %1219 = vmatpush.bf16.msra.mxu3 %v2371_v12 }
  0xb9   :  { %1190 = vmatpush.bf16.msra.mxu2 %v2547_v3 }
  0xba   :  { %1200 = vmatpush.bf16.msra.mxu0 %v2311_v15  ;;  %1176 = vmatpush.bf16.msra.mxu1 %v2387_v57  ;;  %v2210_v15 = vld [vmem:[%s4109_s5 + $0x58] sm:$0xf]  ;;  %v435_v57 = vpack.i.b16 %v3521_v59, %v3521_v59 }
  0xbb   :  { %v2211_v21 = vor.u32 %v2835_v17, %v2210_v15 }
  0xbc   :  { %1220 = vmatpush.bf16.msra.mxu3 %v2351_v26  ;;  %v437_v1 = vperm.slane %v435_v57, 0  ;;  %v2550_v26 = vld [vmem:[%s4109_s5 + $0x300] sm:$0xf] }
  0xbd   :  { %1191 = vmatpush.bf16.msra.mxu2 %v2527_v16 }
  0xbe   :  { %1201 = vmatpush.bf16.msra.mxu0 %v2291_v27  ;;  %1177 = vmatpush.bf16.msra.mxu1 %v2367_v10  ;;  %v2907_v27 = vld [vmem:[%s4109_s5 + $0x2ac] sm:$0xf]  ;;  %v446_v10 = vunpack.c.l.bf16 %v437_v1  ;;  %v2512_v1 = vld [vmem:[%s4109_s5 + $0x2c4] sm:$0xf0] }
  0xbf   :  { %v2507_v30 = vor.u32 %v2907_v27, %v2504_v28  ;;  %v2920_v27 = vld [vmem:[%s4109_s5 + $0x310] sm:$0xf0]  ;;  %v2918_v28 = vld [vmem:[%s4109_s5 + $0x304] sm:$0xf] }
  0xc0   :  { %1221 = vmatpush.bf16.msra.mxu3 %v2331_v38  ;;  %v2551_v43 = vor.u32 %v2920_v27, %v2550_v26  ;;  %v2212_v26 = vld [vmem:[%s4109_s5 + $0x6c] sm:$0xf0] }
  0xc1   :  { %1192 = vmatpush.bf16.msra.mxu2 %v2507_v30 }
  0xc2   :  { %1202 = vmatpush.bf16.msra.mxu0 %v2271_v41  ;;  %1178 = vmatpush.bf16.msra.mxu1 %v2347_v22  ;;  %v2487_v41 = vor.u32 %v2902_v39, %v2484_v40  ;;  %v2312_v22 = vld [vmem:[%s4109_s5 + $0x134] sm:$0xf0]  ;;  %v2319_v39 = vor.u32 %v2861_v24, %v2318_v23  ;;  %v2853_v40 = vld [vmem:[%s4109_s5 + $0xfc] sm:$0xf] }
  0xc3   :  { %v2315_v38 = vor.u32 %v2858_v19, %v2312_v22  ;;  %v2238_v19 = vld [vmem:[%s4109_s5 + $0x88] sm:$0xf]  ;;  %v2901_v22 = vld [vmem:[%s4109_s5 + $0x278] sm:$0xf0] }
  0xc5   :  { %1193 = vmatpush.bf16.msra.mxu2 %v2487_v41  ;;  %v2292_v41 = vld [vmem:[%s4109_s5 + $0x10c] sm:$0xf0] }
  0xc6   :  { %1203 = vmatpush.bf16.msra.mxu0 %v2251_v51  ;;  %1179 = vmatpush.bf16.msra.mxu1 %v2327_v35  ;;  %v432_v51 = vpack.i.b16 %v3516_v56, %v3516_v56 }
  0xc8   :  { %v434_v61 = vperm.slane %v432_v51, 0  ;;  %v2295_v51 = vor.u32 %v2853_v40, %v2292_v41  ;;  %v2192_v40 = vld [vmem:[%s4109_s5 + $0x44] sm:$0xf0] }
  0xca   :  { %1204 = vmatpush.bf16.msra.mxu0 %v2231_v6  ;;  %v445_v3 = vunpack.c.l.bf16 %v434_v61  ;;  %v2851_v61 = vld [vmem:[%s4109_s5 + $0xe8] sm:$0xf0] }
  0xce   :  { %1205 = vmatpush.bf16.msra.mxu0 %v2211_v21 }
  0xd2   :  { %1206 = vmatpush.bf16.msra.mxu0 %v2191_v34 }
  0xd6   :  { %1207 = vmatpush.bf16.msra.mxu0 %v2171_v45  ;;  %v2298_v45 = vld [vmem:[%s4109_s5 + $0x100] sm:$0xf] }
 0x115   :  { %v358_v20 = vpop.f32.mrf.mxu0 }
 0x116   :  { %v386_v25 = vpop.f32.mrf.mxu1 }
 0x11b   :  { %v344_v47 = vpop.f32.mrf.mxu2 }
 0x11c   :  { %v400_v48 = vpop.f32.mrf.mxu3  ;;  %v359_v58 = vadd.f32 %v358_v20, %v344_v47  ;;  %v2530_v47 = vld [vmem:[%s4109_s5 + $0x2d8] sm:$0xf] }
 0x11d   :  { %v360_v44 = vpop.f32.mrf.mxu0 }
 0x11e   :  { %v388_v46 = vpop.f32.mrf.mxu1 }
 0x123   :  { %v346_v63 = vpop.f32.mrf.mxu2 }
 0x124   :  { %v361_v55 = vadd.f32 %v360_v44, %v346_v63  ;;  %v402_v5 = vpop.f32.mrf.mxu3  ;;  %v2555_v44 = vor.u32 %v2918_v28, %v2552_v33  ;;  %v2910_v63 = vld [vmem:[%s4109_s5 + $0x2c0] sm:$0xf0]  ;;  %v2458_v33 = vld [vmem:[%s4109_s5 + $0x240] sm:$0xf] }
 0x125   :  { %v372_v49 = vpop.f32.mrf.mxu0 }
 0x126   :  { %v387_v52 = vadd.f32 %v386_v25, %v372_v49  ;;  %v414_v53 = vpop.f32.mrf.mxu1  ;;  %v2913_v49 = vld [vmem:[%s4109_s5 + $0x2dc] sm:$0xf] }
 0x127   :  { %v415_v54 = vadd.f32 %v414_v53, %v400_v48  ;;  %v2915_v48 = vld [vmem:[%s4109_s5 + $0x2e8] sm:$0xf0]  ;;  %v2848_v53 = vld [vmem:[%s4109_s5 + $0xd4] sm:$0xf] }
 0x128   :  { %v419_v62 = vpack.c.bf16 %v387_v52, %v359_v58  ;;  %v2531_v57 = vor.u32 %v2915_v48, %v2530_v47  ;;  %v2535_v58 = vor.u32 %v2913_v49, %v2532_v50  ;;  %v2831_v47 = vld [vmem:[%s4109_s5 + $0x48] sm:$0xf0]  ;;  %v2438_v48 = vld [vmem:[%s4109_s5 + $0x218] sm:$0xf] }
 0x129   :  { %v420_v0 = vpack.c.bf16 %v415_v54, %v415_v54  ;;  %v2272_v54 = vld [vmem:[%s4109_s5 + $0xe4] sm:$0xf0]  ;;  %v2891_v49 = vld [vmem:[%s4109_s5 + $0x228] sm:$0xf0] }
 0x12a   :  { %v438_v6 = vunpack.c.l.bf16 %v419_v62  ;;  %v439_v56 = vunpack.c.h.bf16 %v419_v62  ;;  %v2510_v62 = vld [vmem:[%s4109_s5 + $0x2b0] sm:$0xf] }
 0x12b   :  { %v440_v9 = vunpack.c.l.bf16 %v420_v0  ;;  %v2908_v0 = vld [vmem:[%s4109_s5 + $0x2b4] sm:$0xf] }
 0x12c   :  { %v447_v13 = vadd.f32 %v444_v2, %v438_v6  ;;  %v448_v14 = vadd.f32 %v445_v3, %v439_v56  ;;  %v2515_v6 = vor.u32 %v2908_v0, %v2512_v1  ;;  %v2258_v56 = vld [vmem:[%s4109_s5 + $0xb0] sm:$0xf]  ;;  %v2886_v0 = vld [vmem:[%s4109_s5 + $0x200] sm:$0xf0] }
 0x12d   :  { %v374_v4 = vpop.f32.mrf.mxu0  ;;  %v449_v17 = vadd.f32 %v446_v10, %v440_v9  ;;  %v2905_v9 = vld [vmem:[%s4109_s5 + $0x298] sm:$0xf0] }
 0x12e   :  { %v389_v7 = vadd.f32 %v388_v46, %v374_v4  ;;  %v416_v8 = vpop.f32.mrf.mxu1  ;;  %v463_v29 = vmax.f32 %v447_v13, 0.0  ;;  %v464_v30 = vmax.f32 %v448_v14, 0.0  ;;  %v2856_v46 = vld [vmem:[%s4109_s5 + $0x110] sm:$0xf0]  ;;  %v2843_v4 = vld [vmem:[%s4109_s5 + $0xac] sm:$0xf] }
 0x12f   :  { %v417_v11 = vadd.f32 %v416_v8, %v402_v5  ;;  %v465_v34 = vmax.f32 %v449_v17, 0.0  ;;  %v2299_v52 = vor.u32 %v2856_v46, %v2298_v45  ;;  %v2511_v5 = vor.u32 %v2910_v63, %v2510_v62  ;;  %v2490_v8 = vld [vmem:[%s4109_s5 + $0x288] sm:$0xf]  ;;  %v2838_v13 = vld [vmem:[%s4109_s5 + $0x84] sm:$0xf] }
 0x130   :  { %v421_v59 = vpack.c.bf16 %v389_v7, %v361_v55  ;;  %v2252_v55 = vld [vmem:[%s4109_s5 + $0xbc] sm:$0xf0]  ;;  %v2846_v7 = vld [vmem:[%s4109_s5 + $0xc0] sm:$0xf0]  ;;  %v2232_v14 = vld [vmem:[%s4109_s5 + $0x94] sm:$0xf0] }
 0x131   :  { %v422_v12 = vpack.c.bf16 %v417_v11, %v417_v11  ;;  %v2492_v11 = vld [vmem:[%s4109_s5 + $0x29c] sm:$0xf0]  ;;  %v2898_v17 = vld [vmem:[%s4109_s5 + $0x264] sm:$0xf]  ;;  %v2235_v23 = vor.u32 %v2838_v13, %v2232_v14  ;;  %v2432_v45 = vld [vmem:[%s4109_s5 + $0x224] sm:$0xf0] }
 0x132   :  { %v441_v15 = vunpack.c.l.bf16 %v421_v59  ;;  %v442_v16 = vunpack.c.h.bf16 %v421_v59  ;;  %v2255_v59 = vor.u32 %v2843_v4, %v2252_v55  ;;  %v2198_v46 = vld [vmem:[%s4109_s5 + $0x38] sm:$0xf]  ;;  %v2826_v62 = vld [vmem:[%s4109_s5 + $0x20] sm:$0xf0]  ;;  %v2418_v63 = vld [vmem:[%s4109_s5 + $0x1f0] sm:$0xf] }
 0x133   :  { %v443_v18 = vunpack.c.l.bf16 %v422_v12  ;;  %v2259_v12 = vor.u32 %v2846_v7, %v2258_v56  ;;  %v2419_v4 = vor.u32 %v2886_v0, %v2418_v63  ;;  %v2878_v55 = vld [vmem:[%s4109_s5 + $0x1c4] sm:$0xf]  ;;  %v2881_v56 = vld [vmem:[%s4109_s5 + $0x1d8] sm:$0xf0]  ;;  %v2558_v7 = vld [vmem:[%s4109_s5 + $0x308] sm:$0xf] }
 0x134   :  { %v450_v20 = vadd.f32 %v444_v2, %v441_v15  ;;  %v451_v21 = vadd.f32 %v445_v3, %v442_v16  ;;  %v2275_v2 = vor.u32 %v2848_v53, %v2272_v54  ;;  %v2279_v3 = vor.u32 %v2851_v61, %v2278_v60  ;;  %v2172_v53 = vld [vmem:[%s4109_s5 + $0x1c] sm:$0xf0]  ;;  %v2178_v61 = vld [vmem:[%s4109_s5 + $0x10] sm:$0xf]  ;;  %v2876_v14 = vld [vmem:[%s4109_s5 + $0x1b0] sm:$0xf0] }
 0x135   :  { %v452_v25 = vadd.f32 %v446_v10, %v443_v18  ;;  %v2903_v10 = vld [vmem:[%s4109_s5 + $0x28c] sm:$0xf]  ;;  %v2491_v15 = vor.u32 %v2905_v9, %v2490_v8  ;;  %v2472_v18 = vld [vmem:[%s4109_s5 + $0x274] sm:$0xf0]  ;;  %v2199_v54 = vor.u32 %v2831_v47, %v2198_v46  ;;  %v2412_v60 = vld [vmem:[%s4109_s5 + $0x1fc] sm:$0xf0] }
 0x136   :  { %v466_v31 = vmax.f32 %v450_v20, 0.0  ;;  %v467_v32 = vmax.f32 %v451_v21, 0.0  ;;  %v2495_v16 = vor.u32 %v2903_v10, %v2492_v11  ;;  %v2841_v20 = vld [vmem:[%s4109_s5 + $0x98] sm:$0xf0]  ;;  %v2478_v21 = vld [vmem:[%s4109_s5 + $0x268] sm:$0xf]  ;;  %v2475_v24 = vor.u32 %v2898_v17, %v2472_v18 }
 0x137   :  { %v468_v35 = vmax.f32 %v452_v25, 0.0  ;;  %v2833_v25 = vld [vmem:[%s4109_s5 + $0x5c] sm:$0xf]  ;;  %v2239_v27 = vor.u32 %v2841_v20, %v2238_v19  ;;  %v2479_v28 = vor.u32 %v2901_v22, %v2478_v21  ;;  %v2378_v13 = vld [vmem:[%s4109_s5 + $0x1a0] sm:$0xf]  ;;  %v2960_v0 = vld [vmem:[%s4111_s7 + $0x130] sm:$0xff] }
 0x138   :  { %v3646_v36 = vpack.c.bf16 %v466_v31, %v463_v29  ;;  %v3648_v37 = vpack.c.bf16 %v467_v32, %v464_v30  ;;  %v2893_v29 = vld [vmem:[%s4109_s5 + $0x23c] sm:$0xf]  ;;  %v2452_v30 = vld [vmem:[%s4109_s5 + $0x24c] sm:$0xf0]  ;;  %v2218_v31 = vld [vmem:[%s4109_s5 + $0x60] sm:$0xf]  ;;  %v2379_v18 = vor.u32 %v2876_v14, %v2378_v13 }
 0x139   :  { %v3656_v42 = vpack.c.bf16 %v468_v35, %v465_v34  ;;  %v2836_v32 = vld [vmem:[%s4109_s5 + $0x70] sm:$0xf0]  ;;  %v2215_v35 = vor.u32 %v2833_v25, %v2212_v26  ;;  %v2921_v8 = vld [vmem:[%s4109_s5 + $0x318] sm:$0xf0]  ;;  %v2352_v21 = vld [vmem:[%s4109_s5 + $0x184] sm:$0xf0] }
 0x13a   :  { %1124 = vmatmul.bf16.vlgmr.msrb.gmra.mxu2 %v3646_v36  ;;  %1138 = vmatmul.bf16.vlgmr.msrb.gmra.mxu0 %v3648_v37  ;;  %v2896_v34 = vld [vmem:[%s4109_s5 + $0x250] sm:$0xf0]  ;;  %v2219_v41 = vor.u32 %v2836_v32, %v2218_v31  ;;  %v2559_v11 = vor.u32 %v2921_v8, %v2558_v7  ;;  %v2358_v22 = vld [vmem:[%s4109_s5 + $0x178] sm:$0xf]  ;;  %v2866_v31 = vld [vmem:[%s4109_s5 + $0x160] sm:$0xf0] }
 0x13b   :  { %2560 = vmatmul.msk.bf16.vlgmr.msrb.gmra.mxu1 %vm1112_vm2, %v3656_v42  ;;  %1166 = vmatmul.bf16.vlgmr.msrb.gmra.mxu3 %v3646_v36  ;;  %v2868_v20 = vld [vmem:[%s4109_s5 + $0x174] sm:$0xf]  ;;  %v2498_v32 = vld [vmem:[%s4109_s5 + $0x290] sm:$0xf]  ;;  %v2925_v46 = vld [vmem:[%s4111_s7 + $0x18] sm:$0xff] }
 0x13c   :  { %1242 = vmatpush.bf16.msrb.mxu1 %v2315_v38  ;;  %1284 = vmatpush.bf16.msrb.mxu3 %v2319_v39  ;;  %v2455_v38 = vor.u32 %v2893_v29, %v2452_v30  ;;  %v2828_v39 = vld [vmem:[%s4109_s5 + $0x34] sm:$0xf]  ;;  %v2355_v25 = vor.u32 %v2868_v20, %v2352_v21  ;;  %v2332_v29 = vld [vmem:[%s4109_s5 + $0x15c] sm:$0xf0]  ;;  %v2338_v30 = vld [vmem:[%s4109_s5 + $0x150] sm:$0xf] }
 0x13d   :  { %1232 = vmatpush.bf16.msrb.mxu2 %v2551_v43  ;;  %1274 = vmatpush.bf16.msrb.mxu0 %v2555_v44  ;;  %v2459_v43 = vor.u32 %v2896_v34, %v2458_v33  ;;  %v2888_v44 = vld [vmem:[%s4109_s5 + $0x214] sm:$0xf]  ;;  %v2195_v50 = vor.u32 %v2828_v39, %v2192_v40  ;;  %v2906_v33 = vld [vmem:[%s4109_s5 + $0x2a0] sm:$0xf0]  ;;  %v2929_v39 = vld [vmem:[%s4111_s7 + $0x38] sm:$0xff] }
 0x13e   :  { %v2937_v40 = vld [vmem:[%s4111_s7 + $0x78] sm:$0xff]  ;;  %v2952_v7 = vld [vmem:[%s4111_s7 + $0xf0] sm:$0xff]  ;;  %v1335_v8 = vld [vmem:[#allocation1] sm:$0xff] }
 0x13f   :  { %v2933_v47 = vld [vmem:[%s4111_s7 + $0x58] sm:$0xff]  ;;  %v1340_v13 = vpack.i.b16 %v1335_v8, %v1335_v8 }
 0x140   :  { %1243 = vmatpush.bf16.msrb.mxu1 %v2295_v51  ;;  %1285 = vmatpush.bf16.msrb.mxu3 %v2299_v52  ;;  %v2435_v51 = vor.u32 %v2888_v44, %v2432_v45  ;;  %v2823_v52 = vld [vmem:[%s4109_s5 + $0xc] sm:$0xf]  ;;  %v2926_v44 = vld [vmem:[%s4111_s7 + $0x20] sm:$0xff] }
 0x141   :  { %1233 = vmatpush.bf16.msrb.mxu2 %v2531_v57  ;;  %1275 = vmatpush.bf16.msrb.mxu0 %v2535_v58  ;;  %v2439_v57 = vor.u32 %v2891_v49, %v2438_v48  ;;  %v2883_v58 = vld [vmem:[%s4109_s5 + $0x1ec] sm:$0xf]  ;;  %v2175_v1 = vor.u32 %v2823_v52, %v2172_v53  ;;  %v2934_v45 = vld [vmem:[%s4111_s7 + $0x60] sm:$0xff]  ;;  %v2924_v48 = vld [vmem:[%s4111_s7 + $0x10] sm:$0xff] }
 0x142   :  { %v2923_v52 = vld [vmem:[%s4111_s7 + $0x8] sm:$0xff] }
 0x143   :  { %v2931_v53 = vld [vmem:[%s4111_s7 + $0x48] sm:$0xff] }
 0x144   :  { %1244 = vmatpush.bf16.msrb.mxu1 %v2275_v2  ;;  %1286 = vmatpush.bf16.msrb.mxu3 %v2279_v3  ;;  %v2415_v2 = vor.u32 %v2883_v58, %v2412_v60  ;;  %v2179_v3 = vor.u32 %v2826_v62, %v2178_v61  ;;  %v2930_v61 = vld [vmem:[%s4111_s7 + $0x40] sm:$0xff]  ;;  %v2961_v62 = vld [vmem:[%s4111_s7 + $0x138] sm:$0xff] }
 0x145   :  { %1234 = vmatpush.bf16.msrb.mxu2 %v2511_v5  ;;  %1276 = vmatpush.bf16.msrb.mxu0 %v2515_v6  ;;  %v2392_v5 = vld [vmem:[%s4109_s5 + $0x1d4] sm:$0xf0]  ;;  %v2398_v6 = vld [vmem:[%s4109_s5 + $0x1c8] sm:$0xf] }
 0x146   :  { %v2395_v9 = vor.u32 %v2878_v55, %v2392_v5  ;;  %v2399_v10 = vor.u32 %v2881_v56, %v2398_v6  ;;  %v2959_v55 = vld [vmem:[%s4111_s7 + $0x128] sm:$0xff]  ;;  %v2944_v56 = vld [vmem:[%s4111_s7 + $0xb0] sm:$0xff] }
 0x148   :  { %1245 = vmatpush.bf16.msrb.mxu1 %v2255_v59  ;;  %1287 = vmatpush.bf16.msrb.mxu3 %v2259_v12  ;;  %v2873_v59 = vld [vmem:[%s4109_s5 + $0x19c] sm:$0xf]  ;;  %v2372_v12 = vld [vmem:[%s4109_s5 + $0x1ac] sm:$0xf0] }
 0x149   :  { %1235 = vmatpush.bf16.msrb.mxu2 %v2491_v15  ;;  %1277 = vmatpush.bf16.msrb.mxu0 %v2495_v16  ;;  %v2538_v15 = vld [vmem:[%s4109_s5 + $0x2e0] sm:$0xf]  ;;  %v2916_v16 = vld [vmem:[%s4109_s5 + $0x2f0] sm:$0xf0]  ;;  %v2375_v17 = vor.u32 %v2873_v59, %v2372_v12 }
 0x14a   :  { %2561 = vmatmul.msk.bf16.vlgmr.msra.gmra.mxu2 %vm1112_vm2, %v3656_v42  ;;  %1208 = vmatmul.bf16.vlgmr.msra.gmra.mxu0 %v3646_v36  ;;  %v2539_v19 = vor.u32 %v2916_v16, %v2538_v15  ;;  %v2943_v15 = vld [vmem:[%s4111_s7 + $0xa8] sm:$0xff] }
 0x14b   :  { %1180 = vmatmul.bf16.vlgmr.msra.gmra.mxu1 %v3648_v37  ;;  %1222 = vmatmul.bf16.vlgmr.msra.gmra.mxu3 %v3648_v37  ;;  %v2951_v16 = vld [vmem:[%s4111_s7 + $0xe8] sm:$0xff] }
 0x14c   :  { %1246 = vmatpush.bf16.msrb.mxu1 %v2235_v23  ;;  %1288 = vmatpush.bf16.msrb.mxu3 %v2239_v27  ;;  %v2518_v23 = vld [vmem:[%s4109_s5 + $0x2b8] sm:$0xf] }
 0x14d   :  { %1256 = vmatpush.bf16.msra.mxu2 %v2475_v24  ;;  %1298 = vmatpush.bf16.msra.mxu0 %v2479_v28  ;;  %v2911_v24 = vld [vmem:[%s4109_s5 + $0x2c8] sm:$0xf0] }
 0x14e   :  { %v2519_v27 = vor.u32 %v2911_v24, %v2518_v23  ;;  %v2863_v28 = vld [vmem:[%s4109_s5 + $0x14c] sm:$0xf]  ;;  %v2942_v23 = vld [vmem:[%s4111_s7 + $0xa0] sm:$0xff] }
 0x14f   :  { %v2335_v34 = vor.u32 %v2863_v28, %v2332_v29  ;;  %v2956_v28 = vld [vmem:[%s4111_s7 + $0x110] sm:$0xff] }
 0x150   :  { %1247 = vmatpush.bf16.msrb.mxu1 %v2215_v35  ;;  %1289 = vmatpush.bf16.msrb.mxu3 %v2219_v41  ;;  %v2339_v35 = vor.u32 %v2866_v31, %v2338_v30  ;;  %v2928_v41 = vld [vmem:[%s4111_s7 + $0x30] sm:$0xff] }
 0x151   :  { %1257 = vmatpush.bf16.msra.mxu2 %v2455_v38  ;;  %1299 = vmatpush.bf16.msra.mxu0 %v2459_v43  ;;  %v2499_v38 = vor.u32 %v2906_v33, %v2498_v32  ;;  %v2935_v43 = vld [vmem:[%s4111_s7 + $0x68] sm:$0xff]  ;;  %v2941_v33 = vld [vmem:[%s4111_s7 + $0x98] sm:$0xff] }
 0x154   :  { %1248 = vmatpush.bf16.msrb.mxu1 %v2195_v50  ;;  %1290 = vmatpush.bf16.msrb.mxu3 %v2199_v54  ;;  %v2932_v50 = vld [vmem:[%s4111_s7 + $0x50] sm:$0xff] }
 0x155   :  { %1258 = vmatpush.bf16.msra.mxu2 %v2435_v51  ;;  %1300 = vmatpush.bf16.msra.mxu0 %v2439_v57  ;;  %v2922_v57 = vld [vmem:[%s4111_s7] sm:$0xff] }
 0x158   :  { %1249 = vmatpush.bf16.msrb.mxu1 %v2175_v1  ;;  %1291 = vmatpush.bf16.msrb.mxu3 %v2179_v3  ;;  %v2953_v3 = vld [vmem:[%s4111_s7 + $0xf8] sm:$0xff] }
 0x159   :  { %1259 = vmatpush.bf16.msra.mxu2 %v2415_v2  ;;  %1301 = vmatpush.bf16.msra.mxu0 %v2419_v4  ;;  %v2945_v2 = vld [vmem:[%s4111_s7 + $0xb8] sm:$0xff] }
 0x15a   :  { %2562 = vmatmul.msk.bf16.vlgmr.msrb.gmra.mxu2 %vm1112_vm2, %v3656_v42  ;;  %2563 = vmatmul.msk.bf16.vlgmr.msrb.gmra.mxu0 %vm1112_vm2, %v3656_v42 }
 0x15b   :  { %1250 = vmatmul.bf16.vlgmr.msrb.gmra.mxu1 %v3646_v36  ;;  %1292 = vmatmul.bf16.vlgmr.msrb.gmra.mxu3 %v3646_v36  ;;  %v2871_v36 = vld [vmem:[%s4109_s5 + $0x188] sm:$0xf0] }
 0x15c   :  { %1316 = vmatpush.bf16.msra.mxu1 %v2559_v11  ;;  %v2359_v26 = vor.u32 %v2871_v36, %v2358_v22  ;;  %1759 = vmatpush.bf16.msra.mxu3 %v2945_v2  ;;  %v1342_v22 = vperm.slane %v1340_v13, 0  ;;  %v1338_v13 = vld [vmem:[#allocation1 + $0x1b] sm:$0xff] }
 0x15d   :  { %1260 = vmatpush.bf16.msra.mxu2 %v2395_v9  ;;  %1302 = vmatpush.bf16.msra.mxu0 %v2399_v10  ;;  %v1336_v9 = vld [vmem:[#allocation1 + $0x9] sm:$0xff]  ;;  %v2958_v10 = vld [vmem:[%s4111_s7 + $0x120] sm:$0xff] }
 0x15e   :  { %v1343_v14 = vpack.i.b16 %v1336_v9, %v1336_v9  ;;  %v1365_v30 = vunpack.c.l.bf16 %v1342_v22 }
 0x160   :  { %1317 = vmatpush.bf16.msra.mxu1 %v2539_v19  ;;  %1760 = vmatpush.bf16.msra.mxu3 %v2944_v56  ;;  %v2957_v19 = vld [vmem:[%s4111_s7 + $0x118] sm:$0xff]  ;;  %v1345_v36 = vperm.slane %v1343_v14, 0 }
 0x161   :  { %1261 = vmatpush.bf16.msra.mxu2 %v2375_v17  ;;  %1303 = vmatpush.bf16.msra.mxu0 %v2379_v18 }
 0x162   :  { %v1366_v31 = vunpack.c.l.bf16 %v1345_v36 }
 0x164   :  { %1318 = vmatpush.bf16.msra.mxu1 %v2519_v27  ;;  %1761 = vmatpush.bf16.msra.mxu3 %v2943_v15 }
 0x165   :  { %1262 = vmatpush.bf16.msra.mxu2 %v2355_v25  ;;  %1304 = vmatpush.bf16.msra.mxu0 %v2359_v26  ;;  %v2950_v26 = vld [vmem:[%s4111_s7 + $0xe0] sm:$0xff] }
 0x168   :  { %1319 = vmatpush.bf16.msra.mxu1 %v2499_v38  ;;  %1762 = vmatpush.bf16.msra.mxu3 %v2942_v23 }
 0x169   :  { %1263 = vmatpush.bf16.msra.mxu2 %v2335_v34  ;;  %1305 = vmatpush.bf16.msra.mxu0 %v2339_v35  ;;  %v2949_v34 = vld [vmem:[%s4111_s7 + $0xd8] sm:$0xff] }
 0x16b   :  { %2564 = vmatmul.msk.bf16.vlgmr.msra.gmra.mxu1 %vm1112_vm2, %v3656_v42  ;;  %v2927_v42 = vld [vmem:[%s4111_s7 + $0x28] sm:$0xff] }
 0x16c   :  { %1264 = vmatmul.bf16.vlgmr.msra.gmra.mxu2 %v3648_v37  ;;  %1306 = vmatmul.bf16.vlgmr.msra.gmra.mxu0 %v3648_v37  ;;  %v2936_v37 = vld [vmem:[%s4111_s7 + $0x70] sm:$0xff] }
 0x16d   :  { %1731 = vmatpush.bf16.msrb.mxu2 %v2929_v39  ;;  %1745 = vmatpush.bf16.msrb.mxu1 %v2937_v40 }
 0x16e   :  { %1773 = vmatpush.bf16.msrb.mxu0 %v2953_v3  ;;  %1763 = vmatpush.bf16.msra.mxu3 %v2941_v33 }
 0x171   :  { %1732 = vmatpush.bf16.msrb.mxu2 %v2928_v41  ;;  %1746 = vmatpush.bf16.msrb.mxu1 %v2936_v37  ;;  %v2955_v37 = vld [vmem:[%s4111_s7 + $0x108] sm:$0xff] }
 0x172   :  { %1774 = vmatpush.bf16.msrb.mxu0 %v2952_v7  ;;  %v1339_v7 = vld [vmem:[#allocation1 + $0x24] sm:$0xff] }
 0x175   :  { %1733 = vmatpush.bf16.msrb.mxu2 %v2927_v42  ;;  %1747 = vmatpush.bf16.msrb.mxu1 %v2935_v43 }
 0x176   :  { %1775 = vmatpush.bf16.msrb.mxu0 %v2951_v16 }
 0x179   :  { %1734 = vmatpush.bf16.msrb.mxu2 %v2926_v44  ;;  %1748 = vmatpush.bf16.msrb.mxu1 %v2934_v45  ;;  %v2940_v44 = vld [vmem:[%s4111_s7 + $0x90] sm:$0xff] }
 0x17a   :  { %1776 = vmatpush.bf16.msrb.mxu0 %v2950_v26  ;;  %v2948_v45 = vld [vmem:[%s4111_s7 + $0xd0] sm:$0xff]  ;;  %1764 = vmatpush.bf16.msra.mxu3 %v2940_v44 }
 0x17d   :  { %1735 = vmatpush.bf16.msrb.mxu2 %v2925_v46  ;;  %1749 = vmatpush.bf16.msrb.mxu1 %v2933_v47 }
 0x17e   :  { %1777 = vmatpush.bf16.msrb.mxu0 %v2949_v34 }
 0x181   :  { %1736 = vmatpush.bf16.msrb.mxu2 %v2924_v48  ;;  %1750 = vmatpush.bf16.msrb.mxu1 %v2932_v50  ;;  %v2954_v50 = vld [vmem:[%s4111_s7 + $0x100] sm:$0xff] }
 0x182   :  { %1778 = vmatpush.bf16.msrb.mxu0 %v2948_v45 }
 0x185   :  { %1737 = vmatpush.bf16.msrb.mxu2 %v2923_v52  ;;  %1751 = vmatpush.bf16.msrb.mxu1 %v2931_v53 }
 0x189   :  { %1738 = vmatpush.bf16.msrb.mxu2 %v2922_v57  ;;  %1752 = vmatpush.bf16.msrb.mxu1 %v2930_v61  ;;  %v2939_v57 = vld [vmem:[%s4111_s7 + $0x88] sm:$0xff] }
 0x18a   :  { %1765 = vmatpush.bf16.msra.mxu3 %v2939_v57 }
 0x18d   :  { %1787 = vmatpush.bf16.msra.mxu2 %v2961_v62 }
 0x191   :  { %1788 = vmatpush.bf16.msra.mxu2 %v2960_v0 }
 0x195   :  { %1789 = vmatpush.bf16.msra.mxu2 %v2959_v55  ;;  %v2938_v55 = vld [vmem:[%s4111_s7 + $0x80] sm:$0xff] }
 0x196   :  { %1766 = vmatpush.bf16.msra.mxu3 %v2938_v55  ;;  %v2965_v55 = vld [vmem:[%s4112_s9 + $0x18] sm:$0xff] }
 0x199   :  { %1790 = vmatpush.bf16.msra.mxu2 %v2958_v10 }
 0x19d   :  { %1791 = vmatpush.bf16.msra.mxu2 %v2957_v19 }
 0x1a1   :  { %1792 = vmatpush.bf16.msra.mxu2 %v2956_v28 }
 0x1a5   :  { %1793 = vmatpush.bf16.msra.mxu2 %v2955_v37 }
 0x1a9   :  { %1794 = vmatpush.bf16.msra.mxu2 %v2954_v50 }
 0x1b7   :  { %v1139_v49 = vpop.f32.mrf.mxu0 }
 0x1b8   :  { %v1153_v51 = vpop.f32.mrf.mxu1 }
 0x1bd   :  { %v1125_v54 = vpop.f32.mrf.mxu2 }
 0x1be   :  { %v1167_v58 = vpop.f32.mrf.mxu3  ;;  %v1140_v11 = vadd.f32 %v1139_v49, %v1125_v54 }
 0x1bf   :  { %v1141_v60 = vpop.f32.mrf.mxu0 }
 0x1c0   :  { %v1155_v63 = vpop.f32.mrf.mxu1  ;;  %v1154_v20 = vadd.f32 %v1153_v51, %v1140_v11  ;;  %v1352_v11 = vpack.i.b16 %v1339_v7, %v1339_v7  ;;  %v2962_v7 = vld [vmem:[%s4112_s9] sm:$0xff] }
 0x1c2   :  { %v1354_v15 = vperm.slane %v1352_v11, 0 }
 0x1c4   :  { %v1369_v26 = vunpack.c.l.bf16 %v1354_v15 }
 0x1c5   :  { %v1127_v1 = vpop.f32.mrf.mxu2 }
 0x1c6   :  { %v1169_v6 = vpop.f32.mrf.mxu3  ;;  %v1142_v24 = vadd.f32 %v1141_v60, %v1127_v1 }
 0x1c7   :  { %v3972_v4 = vpop.f32.mrf.mxu0 }
 0x1c8   :  { %v1181_v5 = vpop.f32.mrf.mxu1  ;;  %v1156_v35 = vadd.f32 %v1155_v63, %v1142_v24 }
 0x1c9   :  { %v1182_v59 = vadd.f32 %v1181_v5, %v1167_v58  ;;  %v2947_v58 = vld [vmem:[%s4111_s7 + $0xc8] sm:$0xff]  ;;  %v2946_v5 = vld [vmem:[%s4111_s7 + $0xc0] sm:$0xff] }
 0x1ca   :  { %1779 = vmatpush.bf16.msrb.mxu0 %v2947_v58 }
 0x1cd   :  { %v1195_v12 = vpop.f32.mrf.mxu2 }
 0x1ce   :  { %v1196_v17 = vadd.f32 %v1195_v12, %v1182_v59  ;;  %v4003_v27 = vpop.f32.mrf.mxu3  ;;  %1780 = vmatpush.bf16.msrb.mxu0 %v2946_v5  ;;  %v1337_v12 = vld [vmem:[#allocation1 + $0x12] sm:$0xff] }
 0x1cf   :  { %v3992_v18 = vpop.f32.mrf.mxu0  ;;  %v1346_v19 = vpack.i.b16 %v1337_v12, %v1337_v12  ;;  %v2964_v5 = vld [vmem:[%s4112_s9 + $0x10] sm:$0xff]  ;;  %v2975_v12 = vld [vmem:[%s4113_s11 + $0x28] sm:$0xff] }
 0x1d0   :  { %v1183_v21 = vpop.f32.mrf.mxu1  ;;  %v1326_v25 = vpack.c.bf16 %v1196_v17, %v1154_v20  ;;  %v1349_v20 = vpack.i.b16 %v1338_v13, %v1338_v13 }
 0x1d1   :  { %v1184_v29 = vadd.f32 %v1183_v21, %v1169_v6  ;;  %v1224_v21 = vadd.f32 %v4003_v27, %v3972_v4 }
 0x1d2   :  { %v1355_v38 = vunpack.c.l.bf16 %v1326_v25  ;;  %v1356_v39 = vunpack.c.h.bf16 %v1326_v25 }
 0x1d4   :  { %v1370_v46 = vadd.f32 %v1365_v30, %v1355_v38  ;;  %v1371_v47 = vadd.f32 %v1366_v31, %v1356_v39 }
 0x1d5   :  { %v1197_v32 = vpop.f32.mrf.mxu2 }
 0x1d6   :  { %v1198_v40 = vadd.f32 %v1197_v32, %v1184_v29  ;;  %v1225_v53 = vpop.f32.mrf.mxu3  ;;  %v1396_v60 = vmax.f32 %v1370_v46, 0.0  ;;  %v1397_v61 = vmax.f32 %v1371_v47, 0.0 }
 0x1d7   :  { %v1279_v41 = vpop.f32.mrf.mxu0  ;;  %v1226_v38 = vadd.f32 %v1225_v53, %v3992_v18 }
 0x1d8   :  { %v1329_v42 = vpack.c.bf16 %v1198_v40, %v1156_v35  ;;  %v1251_v43 = vpop.f32.mrf.mxu1 }
 0x1da   :  { %v1360_v48 = vunpack.c.l.bf16 %v1329_v42  ;;  %v1361_v49 = vunpack.c.h.bf16 %v1329_v42 }
 0x1dc   :  { %v1375_v51 = vadd.f32 %v1365_v30, %v1360_v48  ;;  %v1376_v52 = vadd.f32 %v1366_v31, %v1361_v49  ;;  %v1348_v30 = vperm.slane %v1346_v19, 0  ;;  %v1351_v31 = vperm.slane %v1349_v20, 0 }
 0x1dd   :  { %v1237_v54 = vpop.f32.mrf.mxu2 }
 0x1de   :  { %v1401_v62 = vmax.f32 %v1375_v51, 0.0  ;;  %v1402_v63 = vmax.f32 %v1376_v52, 0.0  ;;  %v1293_v56 = vpop.f32.mrf.mxu3  ;;  %v1238_v25 = vadd.f32 %v1237_v54, %v1224_v21  ;;  %v1367_v37 = vunpack.c.l.bf16 %v1348_v30 }
 0x1df   :  { %v1281_v0 = vpop.f32.mrf.mxu0  ;;  %v1368_v4 = vunpack.c.l.bf16 %v1351_v31 }
 0x1e0   :  { %v1253_v1 = vpop.f32.mrf.mxu1  ;;  %v1406_v2 = vpack.c.bf16 %v1401_v62, %v1396_v60  ;;  %v1407_v3 = vpack.c.bf16 %v1402_v63, %v1397_v61 }
 0x1e2   :  { %1739 = vmatmul.bf16.vlgmr.msrb.gmra.mxu2 %v1406_v2  ;;  %1753 = vmatmul.bf16.vlgmr.msrb.gmra.mxu1 %v1407_v3  ;;  %v2967_v2 = vld [vmem:[%s4112_s9 + $0x28] sm:$0xff]  ;;  %v2966_v3 = vld [vmem:[%s4112_s9 + $0x20] sm:$0xff] }
 0x1e5   :  { %v1239_v6 = vpop.f32.mrf.mxu2 }
 0x1e6   :  { %v1295_v22 = vpop.f32.mrf.mxu3 }
 0x1e8   :  { %v1321_v9 = vpop.f32.mrf.mxu1 }
 0x1e9   :  { %v1307_v8 = vpop.f32.mrf.mxu0 }
 0x1ea   :  { %v1308_v10 = vadd.f32 %v1307_v8, %v1293_v56  ;;  %v2963_v56 = vld [vmem:[%s4112_s9 + $0x8] sm:$0xff]  ;;  %v2977_v8 = vld [vmem:[%s4113_s11 + $0x38] sm:$0xff] }
 0x1eb   :  { %1985 = vmatpush.bf16.msrb.mxu3 %v2977_v8 }
 0x1ec   :  { %v1322_v59 = vadd.f32 %v1321_v9, %v1308_v10  ;;  %v2976_v10 = vld [vmem:[%s4113_s11 + $0x30] sm:$0xff] }
 0x1ee   :  { %v1328_v17 = vpack.c.bf16 %v1322_v59, %v1322_v59 }
 0x1ef   :  { %v1265_v14 = vpop.f32.mrf.mxu2  ;;  %1986 = vmatpush.bf16.msrb.mxu3 %v2976_v10 }
 0x1f0   :  { %v1266_v16 = vadd.f32 %v1265_v14, %v1251_v43  ;;  %v1323_v28 = vpop.f32.mrf.mxu1  ;;  %v1359_v29 = vunpack.c.l.bf16 %v1328_v17  ;;  %v1803_v17 = vld [vmem:[%s4114_s8] sm:$0x1] }
 0x1f1   :  { %v1309_v23 = vpop.f32.mrf.mxu0  ;;  %v1805_v21 = vpack.i.b16 %v1803_v17, %v1803_v17 }
 0x1f2   :  { %v1280_v36 = vadd.f32 %v1279_v41, %v1266_v16  ;;  %v1310_v24 = vadd.f32 %v1309_v23, %v1295_v22  ;;  %v1374_v40 = vadd.f32 %v1369_v26, %v1359_v29  ;;  %v1240_v41 = vadd.f32 %v1239_v6, %v1226_v38 }
 0x1f3   :  { %1987 = vmatpush.bf16.msrb.mxu3 %v2975_v12 }
 0x1f4   :  { %v1324_v32 = vadd.f32 %v1323_v28, %v1310_v24  ;;  %v1327_v33 = vpack.c.bf16 %v1280_v36, %v1238_v25  ;;  %v1400_v47 = vmax.f32 %v1374_v40, 0.0  ;;  %v1807_v25 = vperm.slane %v1805_v21, 0 }
 0x1f6   :  { %v1331_v34 = vpack.c.bf16 %v1324_v32, %v1324_v32  ;;  %v1357_v42 = vunpack.c.l.bf16 %v1327_v33  ;;  %v1358_v43 = vunpack.c.h.bf16 %v1327_v33  ;;  %v1810_v32 = vunpack.c.l.bf16 %v1807_v25 }
 0x1f7   :  { %v1267_v35 = vpop.f32.mrf.mxu2 }
 0x1f8   :  { %v1268_v39 = vadd.f32 %v1267_v35, %v1253_v1  ;;  %v1364_v27 = vunpack.c.l.bf16 %v1331_v34  ;;  %v1372_v49 = vadd.f32 %v1367_v37, %v1357_v42  ;;  %v1373_v50 = vadd.f32 %v1368_v4, %v1358_v43  ;;  %v2968_v1 = vld [vmem:[%s4112_s9 + $0x30] sm:$0xff]  ;;  %v2971_v43 = vld [vmem:[%s4113_s11 + $0x8] sm:$0xff] }
 0x1f9   :  { %v2972_v42 = vld [vmem:[%s4113_s11 + $0x10] sm:$0xff] }
 0x1fa   :  { %v1282_v44 = vadd.f32 %v1281_v0, %v1268_v39  ;;  %v1379_v45 = vadd.f32 %v1369_v26, %v1364_v27  ;;  %v1398_v53 = vmax.f32 %v1372_v49, 0.0  ;;  %v1399_v58 = vmax.f32 %v1373_v50, 0.0  ;;  %v2969_v0 = vld [vmem:[%s4112_s9 + $0x38] sm:$0xff]  ;;  %v2974_v27 = vld [vmem:[%s4113_s11 + $0x20] sm:$0xff] }
 0x1fb   :  { %1884 = vmatpush.bf16.msra.mxu1 %v2969_v0  ;;  %1988 = vmatpush.bf16.msrb.mxu3 %v2974_v27 }
 0x1fc   :  { %v1330_v46 = vpack.c.bf16 %v1282_v44, %v1240_v41  ;;  %v1405_v48 = vmax.f32 %v1379_v45, 0.0  ;;  %v2973_v41 = vld [vmem:[%s4113_s11 + $0x18] sm:$0xff]  ;;  %v2970_v44 = vld [vmem:[%s4113_s11] sm:$0xff] }
 0x1fd   :  { %v1900_v45 = vld [vmem:[%s4116_s10] sm:$0x1] }
 0x1fe   :  { %v1362_v51 = vunpack.c.l.bf16 %v1330_v46  ;;  %v1363_v52 = vunpack.c.h.bf16 %v1330_v46  ;;  %v1410_v54 = vpack.c.bf16 %v1405_v48, %v1400_v47  ;;  %v1902_v46 = vpack.i.b16 %v1900_v45, %v1900_v45 }
 0x1ff   :  { %1885 = vmatpush.bf16.msra.mxu1 %v2968_v1  ;;  %1989 = vmatpush.bf16.msrb.mxu3 %v2973_v41 }
 0x200   :  { %v1377_v57 = vadd.f32 %v1367_v37, %v1362_v51  ;;  %v1378_v18 = vadd.f32 %v1368_v4, %v1363_v52  ;;  %1795 = vmatmul.bf16.vlgmr.msra.gmra.mxu2 %v1410_v54  ;;  %v1904_v49 = vperm.slane %v1902_v46, 0 }
 0x202   :  { %v1403_v60 = vmax.f32 %v1377_v57, 0.0  ;;  %v1404_v61 = vmax.f32 %v1378_v18, 0.0  ;;  %v1907_v51 = vunpack.c.l.bf16 %v1904_v49 }
 0x203   :  { %1886 = vmatpush.bf16.msra.mxu1 %v2967_v2  ;;  %1990 = vmatpush.bf16.msrb.mxu3 %v2972_v42 }
 0x204   :  { %v1408_v62 = vpack.c.bf16 %v1403_v60, %v1398_v53  ;;  %v1409_v63 = vpack.c.bf16 %v1404_v61, %v1399_v58 }
 0x206   :  { %1767 = vmatmul.bf16.vlgmr.msra.gmra.mxu3 %v1408_v62  ;;  %1781 = vmatmul.bf16.vlgmr.msrb.gmra.mxu0 %v1409_v63  ;;  %v2978_v62 = vld [vmem:[%s4115_s12] ss:$0 sm:$0xff] }
 0x207   :  { %1887 = vmatpush.bf16.msra.mxu1 %v2966_v3  ;;  %1991 = vmatpush.bf16.msrb.mxu3 %v2971_v43 }
 0x20b   :  { %1888 = vmatpush.bf16.msra.mxu1 %v2965_v55  ;;  %1992 = vmatpush.bf16.msrb.mxu3 %v2970_v44 }
 0x20f   :  { %1889 = vmatpush.bf16.msra.mxu1 %v2964_v5 }
 0x213   :  { %1890 = vmatpush.bf16.msra.mxu1 %v2963_v56 }
 0x217   :  { %1891 = vmatpush.bf16.msra.mxu1 %v2962_v7 }
 0x25f   :  { %v1754_v11 = vpop.f32.mrf.mxu1 }
 0x265   :  { %v1740_v6 = vpop.f32.mrf.mxu2 }
 0x266   :  { %v1755_v59 = vadd.f32 %v1754_v11, %v1740_v6 }
 0x267   :  { %v1756_v22 = vpop.f32.mrf.mxu1 }
 0x26d   :  { %v1742_v9 = vpop.f32.mrf.mxu2 }
 0x26e   :  { %v1757_v36 = vadd.f32 %v1756_v22, %v1742_v9 }
 0x283   :  { %v1782_v13 = vpop.f32.mrf.mxu0  ;;  %v1796_v16 = vpop.f32.mrf.mxu2 }
 0x289   :  { %v1768_v14 = vpop.f32.mrf.mxu3 }
 0x28a   :  { %v1769_v15 = vadd.f32 %v1768_v14, %v1755_v59 }
 0x28b   :  { %v1784_v28 = vpop.f32.mrf.mxu0  ;;  %v1798_v30 = vpop.f32.mrf.mxu2 }
 0x28c   :  { %v1783_v19 = vadd.f32 %v1782_v13, %v1769_v15 }
 0x28e   :  { %v1797_v20 = vadd.f32 %v1796_v16, %v1783_v19 }
 0x290   :  { %v1801_v24 = vpack.c.bf16 %v1797_v20, %v1797_v20 }
 0x291   :  { %v1770_v23 = vpop.f32.mrf.mxu3 }
 0x292   :  { %v1771_v26 = vadd.f32 %v1770_v23, %v1757_v36  ;;  %v1808_v31 = vunpack.c.l.bf16 %v1801_v24 }
 0x294   :  { %v1785_v29 = vadd.f32 %v1784_v28, %v1771_v26  ;;  %v1811_v35 = vadd.f32 %v1810_v32, %v1808_v31 }
 0x296   :  { %v1799_v33 = vadd.f32 %v1798_v30, %v1785_v29  ;;  %v1817_v40 = vmax.f32 %v1811_v35, 0.0 }
 0x298   :  { %v1802_v34 = vpack.c.bf16 %v1799_v33, %v1799_v33 }
 0x29a   :  { %v1809_v38 = vunpack.c.l.bf16 %v1802_v34 }
 0x29c   :  { %v1812_v39 = vadd.f32 %v1810_v32, %v1809_v38 }
 0x29e   :  { %v1818_v37 = vmax.f32 %v1812_v39, 0.0 }
 0x2a0   :  { %v1819_v4 = vpack.c.bf16 %v1818_v37, %v1817_v40 }
 0x2a2   :  { %1892 = vmatmul.bf16.vlgmr.msra.gmra.mxu1 %v1819_v4 }
 0x31f   :  { %v1893_v47 = vpop.f32.mrf.mxu1 }
 0x320   :  { %v1898_v48 = vpack.c.bf16 %v1893_v47, %v1893_v47 }
 0x322   :  { %v1905_v50 = vunpack.c.l.bf16 %v1898_v48 }
 0x324   :  { %v1908_v57 = vadd.f32 %v1907_v51, %v1905_v50 }
 0x326   :  { %v1914_v58 = vmax.f32 %v1908_v57, 0.0 }
 0x327   :  { %v1895_v52 = vpop.f32.mrf.mxu1 }
 0x328   :  { %v1899_v54 = vpack.c.bf16 %v1895_v52, %v1895_v52 }
 0x32a   :  { %v1906_v18 = vunpack.c.l.bf16 %v1899_v54 }
 0x32c   :  { %v1909_v53 = vadd.f32 %v1907_v51, %v1906_v18 }
 0x32e   :  { %v1915_v60 = vmax.f32 %v1909_v53, 0.0 }
 0x330   :  { %v1916_v61 = vpack.c.bf16 %v1915_v60, %v1914_v58 }
 0x332   :  { %1993 = vmatmul.bf16.vlgmr.msrb.gmra.mxu3 %v1916_v61 }
 0x3b5   :  { %v1994_v63 = vpop.f32.mrf.mxu3 }
 0x3b6   :  { %v1995_v0 = vadd.f32 %v2978_v62, %v1994_v63 }
 0x3b8   :  { %1999 = vmax.xlane.f32.xlu0 %v1995_v0 }
 0x3bd   :  { %v1996_v1 = vpop.f32.mrf.mxu3 }
 0x3be   :  { %v1997_v2 = vadd.f32 %v2978_v62, %v1996_v1 }
 0x3c0   :  { %2001 = vmax.xlane.f32.xlu0 %v1997_v2 }
 0x42b   :  { %v2000_v3 = vpop.xlane.xlu0 %1999 }
 0x42c   :  { %v2003_v55 = vsub.f32 %v1995_v0, %v2000_v3 }
 0x42e   :  { %v2005_v5 = vmul.f32 1.442695, %v2003_v55 }
 0x430   :  { %2979 = vpow2.f32 %v2005_v5 }
 0x433   :  { %v2002_v6 = vpop.xlane.xlu0 %2001 }
 0x434   :  { %v2004_v56 = vsub.f32 %v1997_v2, %v2002_v6 }
 0x436   :  { %v2980_v7 = vpop.eup %2979  ;;  %v2007_v8 = vmul.f32 1.442695, %v2004_v56 }
 0x437   :  { %2009 = vadd.xlane.f32.xlu1 %v2980_v7 }
 0x438   :  { %2981 = vpow2.f32 %v2007_v8 }
 0x43e   :  { %v2982_v9 = vpop.eup %2981 }
 0x43f   :  { %2011 = vadd.xlane.f32.xlu1 %v2982_v9 }
 0x4aa   :  { %v2010_v10 = vpop.xlane.xlu1 %2009 }
 0x4ab   :  { %2983 = vrcp.f32 %v2010_v10 }
 0x4b1   :  { %v2984_v11 = vpop.eup %2983 }
 0x4b2   :  { %v2015_v59 = vmul.f32 %v2984_v11, %v2980_v7  ;;  %v2012_v12 = vpop.xlane.xlu1 %2011 }
 0x4b3   :  { %2985 = vrcp.f32 %v2012_v12 }
 0x4b4   :  { %2017 = vst [vmem:[%s4117_s13] sm:$0xff] %v2015_v59 }
 0x4b9   :  { %v2986_v13 = vpop.eup %2985 }
 0x4ba   :  { %v2016_v14 = vmul.f32 %v2986_v13, %v2982_v9 }
 0x4bc   :  { %2018 = vst [vmem:[%s4117_s13 + $0x8] sm:$0xff] %v2016_v14 }

</bundles_post_ra>
